<compile_context>
chip_gen: v7x
topology: tpu7x:2x2x1
jax: 0.10.0
libtpu: 0.0.40
codegen_flags: <defaults>
</compile_context>

<pallas_src>
import math
import functools

import jax
import jax.numpy as jnp
from jax.experimental import pallas as pl
from jax.experimental.pallas import tpu as pltpu


def _round_up(n, m):
    return ((n + m - 1) // m) * m


# ----------------------------- Pallas kernel -----------------------------

def _fused_forward_kernel(x_ref, w_ref, scale_ref, shift_ref,
                          w1_ref, b1_ref, w2_ref, b2_ref, o_ref, *, HW):
    """Fully fused SlimExpert forward for one batch tile.

    x_ref:     (BT*HW, K)  bf16  im2col patches, K = 9*Cin (tap-major, channel-minor)
    w_ref:     (K, C3P)    bf16  flattened 3x3 conv weights (Cout zero-padded to 128)
    scale_ref: (1, C3P)    f32   (gamma / sqrt(var+eps)) / (H*W)          (folded BN + pool)
    shift_ref: (1, C3P)    f32   ((conv_b - mean)*scale + beta) / (H*W)   (folded BN + pool)
    w1_ref:    (C3P, E)    bf16  project weights (padded rows are zero)
    b1_ref:    (1, E)      f32
    w2_ref:    (E, NCP)    bf16  classifier weights (num_classes padded to 128 lanes)
    b2_ref:    (1, NCP)    f32
    o_ref:     (BT, NCP)   f32   lane-dense logits (sliced to num_classes outside)
    """
    bt = o_ref.shape[0]

    # Conv as a single K-deep MXU matmul (no per-tap slicing, no scratch RMW).
    acc = jnp.dot(x_ref[...], w_ref[...], preferred_element_type=jnp.float32)   # (BT*HW, C3P)

    # Folded BN(eval)+bias affine (already scaled by 1/(H*W)) + ReLU.
    y = jnp.maximum(acc * scale_ref[...] + shift_ref[...], 0.0)

    # Global average pool: 1/(H*W) is folded into scale/shift, so a plain sum suffices.
    pooled = jnp.sum(y.reshape(bt, HW, y.shape[-1]), axis=1)                    # (BT, C3P) f32

    # Head: Linear + ReLU (Dropout = identity in eval) + Linear, fused in VMEM.
    z = jnp.dot(pooled.astype(jnp.bfloat16), w1_ref[...],
                preferred_element_type=jnp.float32)
    z = jnp.maximum(z + b1_ref[...], 0.0)
    o_ref[...] = jnp.dot(z.astype(jnp.bfloat16), w2_ref[...],
                         preferred_element_type=jnp.float32) + b2_ref[...]


# ----------------------------- parameters -----------------------------

def init_params(key, c2=128, c3=32, embed_dim=256, num_classes=10):
    k = jax.random.split(key, 10)
    return dict(
        conv_w=jax.random.normal(k[0], (3, 3, c2, c3), jnp.float32) * math.sqrt(2.0 / (9 * c2)),
        conv_b=0.05 * jax.random.normal(k[1], (c3,), jnp.float32),
        bn_gamma=1.0 + 0.1 * jax.random.normal(k[2], (c3,), jnp.float32),
        bn_beta=0.1 * jax.random.normal(k[3], (c3,), jnp.float32),
        bn_mean=0.1 * jax.random.normal(k[4], (c3,), jnp.float32),
        bn_var=0.5 + jax.random.uniform(k[5], (c3,), jnp.float32),
        proj_w=jax.random.normal(k[6], (c3, embed_dim), jnp.float32) * math.sqrt(2.0 / c3),
        proj_b=0.05 * jax.random.normal(k[7], (embed_dim,), jnp.float32),
        cls_w=jax.random.normal(k[8], (embed_dim, num_classes), jnp.float32) * math.sqrt(2.0 / embed_dim),
        cls_b=0.05 * jax.random.normal(k[9], (num_classes,), jnp.float32),
    )
    # NOTE: scorer_project / scorer_head / class_head exist on the module but are
    # not used by SlimExpert.forward(), so they are omitted here.


def prepare_params(p, H, W, eps=1e-5):
    """Fold BN(eval)+bias+1/(H*W) into a per-channel affine, pad to 128 lanes, cast to bf16."""
    c3 = p['conv_w'].shape[-1]
    nc = p['cls_w'].shape[-1]
    c3p = _round_up(c3, 128)
    ncp = _round_up(nc, 128)
    inv_hw = 1.0 / float(H * W)

    scale = p['bn_gamma'] / jnp.sqrt(p['bn_var'] + eps)
    shift = (p['conv_b'] - p['bn_mean']) * scale + p['bn_beta']
    # Fold the average-pool divisor into the affine (valid: ReLU(c*z) = c*ReLU(z), c>0).
    scale = scale * inv_hw
    shift = shift * inv_hw

    w_flat = p['conv_w'].reshape(-1, c3)                    # (9*Cin, c3), (dy,dx,cin)-major
    return dict(
        w=jnp.pad(w_flat, ((0, 0), (0, c3p - c3))).astype(jnp.bfloat16),
        scale=jnp.pad(scale, (0, c3p - c3)).reshape(1, c3p).astype(jnp.float32),
        shift=jnp.pad(shift, (0, c3p - c3)).reshape(1, c3p).astype(jnp.float32),
        w1=jnp.pad(p['proj_w'], ((0, c3p - c3), (0, 0))).astype(jnp.bfloat16),
        b1=p['proj_b'].reshape(1, -1).astype(jnp.float32),
        w2=jnp.pad(p['cls_w'], ((0, 0), (0, ncp - nc))).astype(jnp.bfloat16),
        b2=jnp.pad(p['cls_b'], (0, ncp - nc)).reshape(1, ncp).astype(jnp.float32),
    )


# ----------------------------- forward -----------------------------

@functools.partial(jax.jit, static_argnames=('num_classes',))
def slim_expert_forward(dev, x_nchw, *, num_classes):
    B = x_nchw.shape[0]
    x = jnp.transpose(x_nchw, (0, 2, 3, 1)).astype(jnp.bfloat16)      # NCHW -> NHWC, bf16
    _, H, W, Cin = x.shape
    HW = H * W

    # Batch tile: large enough to give the MXU real work, small enough that the grid
    # has >=2 steps for big batches (v7x megacore).  At B=2 this is 8 (grid=(1,)).
    bt = min(64, _round_up(B, 8))
    b_pad = _round_up(B, bt)

    # Spatial halo pad + batch pad, then wrapper-side im2col (tap-major, channel-minor)
    # matching conv_w.reshape(9*Cin, Cout).  ~1.2 MB HBM at the test shape.
    xp = jnp.pad(x, ((0, b_pad - B), (1, 1), (1, 1), (0, 0)))
    patches = jnp.concatenate(
        [xp[:, dy:dy + H, dx:dx + W, :] for dy in range(3) for dx in range(3)], axis=-1)
    K = 9 * Cin
    x2d = patches.reshape(b_pad * HW, K)

    c3p = dev['w'].shape[-1]
    emb = dev['w1'].shape[-1]
    ncp = dev['w2'].shape[-1]

    out = pl.pallas_call(
        functools.partial(_fused_forward_kernel, HW=HW),
        out_shape=jax.ShapeDtypeStruct((b_pad, ncp), jnp.float32),
        grid_spec=pltpu.PrefetchScalarGridSpec(
            num_scalar_prefetch=0,
            grid=(b_pad // bt,),
            in_specs=[
                pl.BlockSpec((bt * HW, K), lambda i: (i, 0)),   # im2col patches
                pl.BlockSpec((K, c3p), lambda i: (0, 0)),       # conv weights (resident)
                pl.BlockSpec((1, c3p), lambda i: (0, 0)),       # folded BN scale
                pl.BlockSpec((1, c3p), lambda i: (0, 0)),       # folded BN shift
                pl.BlockSpec((c3p, emb), lambda i: (0, 0)),     # project weights (resident)
                pl.BlockSpec((1, emb), lambda i: (0, 0)),
                pl.BlockSpec((emb, ncp), lambda i: (0, 0)),     # classifier weights (resident)
                pl.BlockSpec((1, ncp), lambda i: (0, 0)),
            ],
            out_specs=pl.BlockSpec((bt, ncp), lambda i: (i, 0)),
        ),
        compiler_params=pltpu.CompilerParams(
            dimension_semantics=("parallel",),
            vmem_limit_bytes=32 * 1024 * 1024),
    )(x2d, dev['w'], dev['scale'], dev['shift'],
      dev['w1'], dev['b1'], dev['w2'], dev['b2'])

    return out[:B, :num_classes]


# ------------- pure-JAX reference (matched bf16 quantization points) -------------

def reference_forward(p, x_nchw, eps=1e-5):
    q = lambda a: a.astype(jnp.bfloat16).astype(jnp.float32)
    hi = jax.lax.Precision.HIGHEST
    x = q(jnp.transpose(x_nchw, (0, 2, 3, 1)))
    y = jax.lax.conv_general_dilated(x, q(p['conv_w']), window_strides=(1, 1), padding='SAME',
                                     dimension_numbers=('NHWC', 'HWIO', 'NHWC'), precision=hi)
    y = y + p['conv_b']
    scale = p['bn_gamma'] / jnp.sqrt(p['bn_var'] + eps)
    y = (y - p['bn_mean']) * scale + p['bn_beta']
    y = jnp.maximum(y, 0.0)
    feats = q(jnp.mean(y, axis=(1, 2)))                               # bf16 point matched
    z = jnp.dot(feats, q(p['proj_w']), precision=hi) + p['proj_b']
    z = q(jnp.maximum(z, 0.0))                                        # bf16 point matched
    return jnp.dot(z, q(p['cls_w']), precision=hi) + p['cls_b']


# ----------------------------- main -----------------------------

if __name__ == "__main__":
    key = jax.random.PRNGKey(0)
    pkey, xkey = jax.random.split(key)

    C2, C3, EMBED, NCLS = 128, 32, 256, 10        # hidden_channels=(64, 128, 32), embed_dim=256
    B, H, W = 2, 8, 8

    params = init_params(pkey, c2=C2, c3=C3, embed_dim=EMBED, num_classes=NCLS)
    dev = prepare_params(params, H, W)
    x = jax.random.normal(xkey, (B, C2, H, W), jnp.float32)           # NCHW, like the PyTorch module

    out = slim_expert_forward(dev, x, num_classes=NCLS)
    out = jax.block_until_ready(out)

    assert out.shape == (B, NCLS)
    assert bool(jnp.all(jnp.isfinite(out)))

    ref = reference_forward(params, x)
    err = float(jnp.max(jnp.abs(out - ref)))
    assert err < 2e-2, f"max abs err {err}"

    print("KERNEL_OK")
</pallas_src>

<mosaic_0001>
module attributes {stable_mosaic.version = 11 : i64} {
  func.func @_fused_forward_kernel(%arg0: i32, %arg1: memref<512x1152xbf16, #tpu.memory_space<vmem>>, %arg2: memref<1152x128xbf16, #tpu.memory_space<vmem>>, %arg3: memref<1x128xf32, #tpu.memory_space<vmem>>, %arg4: memref<1x128xf32, #tpu.memory_space<vmem>>, %arg5: memref<128x256xbf16, #tpu.memory_space<vmem>>, %arg6: memref<1x256xf32, #tpu.memory_space<vmem>>, %arg7: memref<256x128xbf16, #tpu.memory_space<vmem>>, %arg8: memref<1x128xf32, #tpu.memory_space<vmem>>, %arg9: memref<8x128xf32, #tpu.memory_space<vmem>>) attributes {dimension_semantics = [#tpu.dimension_semantics<parallel>], iteration_bounds = array<i64: 1>, scalar_prefetch = 0 : i64, scratch_operands = 0 : i64, tpu.core_type = #tpu.core_type<tc>, window_params = [{transform_indices = @transform_0, window_bounds = array<i64: 512, 1152>}, {pipeline_mode = #tpu.pipeline_mode<synchronous>, transform_indices = @transform_1, window_bounds = array<i64: 1152, 128>}, {pipeline_mode = #tpu.pipeline_mode<synchronous>, transform_indices = @transform_2, window_bounds = array<i64: 1, 128>}, {pipeline_mode = #tpu.pipeline_mode<synchronous>, transform_indices = @transform_3, window_bounds = array<i64: 1, 128>}, {pipeline_mode = #tpu.pipeline_mode<synchronous>, transform_indices = @transform_4, window_bounds = array<i64: 128, 256>}, {pipeline_mode = #tpu.pipeline_mode<synchronous>, transform_indices = @transform_5, window_bounds = array<i64: 1, 256>}, {pipeline_mode = #tpu.pipeline_mode<synchronous>, transform_indices = @transform_6, window_bounds = array<i64: 256, 128>}, {pipeline_mode = #tpu.pipeline_mode<synchronous>, transform_indices = @transform_7, window_bounds = array<i64: 1, 128>}, {transform_indices = @transform_8, window_bounds = array<i64: 8, 128>}]} {
    %c0 = arith.constant 0 : index
    %c0_0 = arith.constant 0 : index
    %0 = vector.load %arg1[%c0, %c0_0] : memref<512x1152xbf16, #tpu.memory_space<vmem>>, vector<512x1152xbf16>
    %c0_1 = arith.constant 0 : index
    %c0_2 = arith.constant 0 : index
    %1 = vector.load %arg2[%c0_1, %c0_2] : memref<1152x128xbf16, #tpu.memory_space<vmem>>, vector<1152x128xbf16>
    %cst = arith.constant dense<0.000000e+00> : vector<512x128xf32>
    %2 = tpu.matmul %0, %1, %cst {dimension_numbers = #tpu.dot_dimension_numbers<[1], [0], [0], [1], [0, 0, 1, 1], [], []>} : vector<512x1152xbf16>, vector<1152x128xbf16>, vector<512x128xf32> -> vector<512x128xf32>
    %c0_3 = arith.constant 0 : index
    %c0_4 = arith.constant 0 : index
    %3 = vector.load %arg3[%c0_3, %c0_4] : memref<1x128xf32, #tpu.memory_space<vmem>>, vector<1x128xf32>
    %4 = vector.broadcast %3 : vector<1x128xf32> to vector<512x128xf32>
    %5 = arith.mulf %2, %4 : vector<512x128xf32>
    %c0_5 = arith.constant 0 : index
    %c0_6 = arith.constant 0 : index
    %6 = vector.load %arg4[%c0_5, %c0_6] : memref<1x128xf32, #tpu.memory_space<vmem>>, vector<1x128xf32>
    %7 = vector.broadcast %6 : vector<1x128xf32> to vector<512x128xf32>
    %8 = arith.addf %5, %7 : vector<512x128xf32>
    %cst_7 = arith.constant 0.000000e+00 : f32
    %9 = vector.broadcast %cst_7 : f32 to vector<512x128xf32>
    %10 = arith.maximumf %8, %9 : vector<512x128xf32>
    %11 = vector.shape_cast %10 : vector<512x128xf32> to vector<8x64x128xf32>
    %cst_8 = arith.constant dense<0.000000e+00> : vector<8x128xf32>
    %12 = vector.multi_reduction <add>, %11, %cst_8 [1] : vector<8x64x128xf32> to vector<8x128xf32>
    %13 = arith.truncf %12 : vector<8x128xf32> to vector<8x128xbf16>
    %c0_9 = arith.constant 0 : index
    %c0_10 = arith.constant 0 : index
    %14 = vector.load %arg5[%c0_9, %c0_10] : memref<128x256xbf16, #tpu.memory_space<vmem>>, vector<128x256xbf16>
    %cst_11 = arith.constant dense<0.000000e+00> : vector<8x256xf32>
    %15 = tpu.matmul %13, %14, %cst_11 {dimension_numbers = #tpu.dot_dimension_numbers<[1], [0], [0], [1], [0, 0, 1, 1], [], []>} : vector<8x128xbf16>, vector<128x256xbf16>, vector<8x256xf32> -> vector<8x256xf32>
    %c0_12 = arith.constant 0 : index
    %c0_13 = arith.constant 0 : index
    %16 = vector.load %arg6[%c0_12, %c0_13] : memref<1x256xf32, #tpu.memory_space<vmem>>, vector<1x256xf32>
    %17 = vector.broadcast %16 : vector<1x256xf32> to vector<8x256xf32>
    %18 = arith.addf %15, %17 : vector<8x256xf32>
    %cst_14 = arith.constant 0.000000e+00 : f32
    %19 = vector.broadcast %cst_14 : f32 to vector<8x256xf32>
    %20 = arith.maximumf %18, %19 : vector<8x256xf32>
    %21 = arith.truncf %20 : vector<8x256xf32> to vector<8x256xbf16>
    %c0_15 = arith.constant 0 : index
    %c0_16 = arith.constant 0 : index
    %22 = vector.load %arg7[%c0_15, %c0_16] : memref<256x128xbf16, #tpu.memory_space<vmem>>, vector<256x128xbf16>
    %cst_17 = arith.constant dense<0.000000e+00> : vector<8x128xf32>
    %23 = tpu.matmul %21, %22, %cst_17 {dimension_numbers = #tpu.dot_dimension_numbers<[1], [0], [0], [1], [0, 0, 1, 1], [], []>} : vector<8x256xbf16>, vector<256x128xbf16>, vector<8x128xf32> -> vector<8x128xf32>
    %c0_18 = arith.constant 0 : index
    %c0_19 = arith.constant 0 : index
    %24 = vector.load %arg8[%c0_18, %c0_19] : memref<1x128xf32, #tpu.memory_space<vmem>>, vector<1x128xf32>
    %25 = vector.broadcast %24 : vector<1x128xf32> to vector<8x128xf32>
    %26 = arith.addf %23, %25 : vector<8x128xf32>
    %c0_20 = arith.constant 0 : index
    %c0_21 = arith.constant 0 : index
    %27 = vector.load %arg9[%c0_20, %c0_21] : memref<8x128xf32, #tpu.memory_space<vmem>>, vector<8x128xf32>
    tpu.vector_store %arg9[%c0_20, %c0_21], %26 {strides = array<i32>} : memref<8x128xf32, #tpu.memory_space<vmem>>, vector<8x128xf32>,
    return
  }
  func.func @transform_0(%arg0: i32) -> (i32, i32) {
    %c0_i32 = arith.constant 0 : i32
    %c0_i32_0 = arith.constant 0 : i32
    return %arg0, %c0_i32 : i32, i32
  }
  func.func @transform_1(%arg0: i32) -> (i32, i32) {
    %c0_i32 = arith.constant 0 : i32
    %c0_i32_0 = arith.constant 0 : i32
    %c0_i32_1 = arith.constant 0 : i32
    return %c0_i32, %c0_i32_0 : i32, i32
  }
  func.func @transform_2(%arg0: i32) -> (i32, i32) {
    %c0_i32 = arith.constant 0 : i32
    %c0_i32_0 = arith.constant 0 : i32
    %c0_i32_1 = arith.constant 0 : i32
    return %c0_i32, %c0_i32_0 : i32, i32
  }
  func.func @transform_3(%arg0: i32) -> (i32, i32) {
    %c0_i32 = arith.constant 0 : i32
    %c0_i32_0 = arith.constant 0 : i32
    %c0_i32_1 = arith.constant 0 : i32
    return %c0_i32, %c0_i32_0 : i32, i32
  }
  func.func @transform_4(%arg0: i32) -> (i32, i32) {
    %c0_i32 = arith.constant 0 : i32
    %c0_i32_0 = arith.constant 0 : i32
    %c0_i32_1 = arith.constant 0 : i32
    return %c0_i32, %c0_i32_0 : i32, i32
  }
  func.func @transform_5(%arg0: i32) -> (i32, i32) {
    %c0_i32 = arith.constant 0 : i32
    %c0_i32_0 = arith.constant 0 : i32
    %c0_i32_1 = arith.constant 0 : i32
    return %c0_i32, %c0_i32_0 : i32, i32
  }
  func.func @transform_6(%arg0: i32) -> (i32, i32) {
    %c0_i32 = arith.constant 0 : i32
    %c0_i32_0 = arith.constant 0 : i32
    %c0_i32_1 = arith.constant 0 : i32
    return %c0_i32, %c0_i32_0 : i32, i32
  }
  func.func @transform_7(%arg0: i32) -> (i32, i32) {
    %c0_i32 = arith.constant 0 : i32
    %c0_i32_0 = arith.constant 0 : i32
    %c0_i32_1 = arith.constant 0 : i32
    return %c0_i32, %c0_i32_0 : i32, i32
  }
  func.func @transform_8(%arg0: i32) -> (i32, i32) {
    %c0_i32 = arith.constant 0 : i32
    %c0_i32_0 = arith.constant 0 : i32
    return %arg0, %c0_i32 : i32, i32
  }
}

</mosaic_0001>

<bundles_post_ra>
// kernel: slim_expert_forward.1
= control target key start
LH: loop header
LB: loop body
LE: loop exit
PB: predicated region body
PF: predicated region fallthrough
CT: control target
= control target key end

     0   :  { %v5946_v0 = vmov 0   ;;  %vm4205_vm0 = vcmask 1041409   ;;  %vm4207_vm1 = vcmask 1042434   ;;  %vm4209_vm2 = vcmask 1043459   ;;  %s7826_s1 = inlined_call_operand.vmem [shape: bf16[1152,128], index: 1, kind: input, shape index: {}]   ;;  %s7827_s0 = inlined_call_operand.vmem [shape: bf16[512,1152], index: 0, kind: input, shape index: {}]   ;;  %s7828_s4 = inlined_call_operand.vmem [shape: bf16[128,256], index: 4, kind: input, shape index: {}]   ;;  %s7829_s2 = inlined_call_operand.vmem [shape: f32[1,128], index: 2, kind: input, shape index: {}]   ;;  %s7830_s3 = inlined_call_operand.vmem [shape: f32[1,128], index: 3, kind: input, shape index: {}]   ;;  %s7831_s6 = inlined_call_operand.vmem [shape: bf16[256,128], index: 6, kind: input, shape index: {}]   ;;  %s7832_s5 = inlined_call_operand.vmem [shape: f32[1,256], index: 5, kind: input, shape index: {}]   ;;  %s7833_s7 = inlined_call_operand.vmem [shape: f32[1,128], index: 7, kind: input, shape index: {}]   ;;  %s7834_s8 = inlined_call_operand.vmem [shape: f32[8,128], index: 8, kind: output, shape index: {}]  }
   0x1   :  { %2398 = vmatprep.subr.bf16.mxu1 %v5946_v0  ;;  %2687 = vmatprep.subr.bf16.mxu0 %v5946_v0  ;;  %v5416_v1 = vld [vmem:[%s7826_s1] sm:$0xff]   ;;  %v5418_v3 = vld [vmem:[%s7826_s1 + $0x8] sm:$0xff]   ;;  %v5420_v5 = vld [vmem:[%s7826_s1 + $0x10] sm:$0xff]   ;;  %vm4211_vm3 = vcmask 1044484   ;;  %vm4213_vm4 = vcmask 1045509   ;;  %vm4215_vm5 = vcmask 1046534  }
   0x2   :  { %v6000_v2 = vld [vmem:[%s7826_s1 + $0x80] sm:$0xff]   ;;  %2399 = vmatpush1.bf16.msra.mxu1 %v5416_v1  ;;  %v6010_v4 = vld [vmem:[%s7826_s1 + $0x88] sm:$0xff]   ;;  %v6021_v6 = vld [vmem:[%s7826_s1 + $0x90] sm:$0xff]   ;;  %vm4217_vm6 = vcmask 1047559  }
   0x3   :  { %2688 = vmatpush1.bf16.msra.mxu0 %v6000_v2  ;;  %2400 = vmatprep.subr.bf16.mxu1 %v5946_v0  ;;  %v5422_v7 = vld [vmem:[%s7826_s1 + $0x18] sm:$0xff]   ;;  %v5424_v9 = vld [vmem:[%s7826_s1 + $0x20] sm:$0xff]   ;;  %v5426_v11 = vld [vmem:[%s7826_s1 + $0x28] sm:$0xff]  }
   0x4   :  { %2689 = vmatprep.subr.bf16.mxu0 %v5946_v0  ;;  %v6032_v8 = vld [vmem:[%s7826_s1 + $0x98] sm:$0xff]   ;;  %v6043_v10 = vld [vmem:[%s7826_s1 + $0xa0] sm:$0xff]   ;;  %v6054_v12 = vld [vmem:[%s7826_s1 + $0xa8] sm:$0xff]  }
   0x5   :  { %v5428_v13 = vld [vmem:[%s7826_s1 + $0x30] sm:$0xff]   ;;  %v5430_v15 = vld [vmem:[%s7826_s1 + $0x38] sm:$0xff]   ;;  %v5432_v17 = vld [vmem:[%s7826_s1 + $0x40] sm:$0xff]  }
   0x6   :  { %2401 = vmatpush1.bf16.msra.mxu1 %v5418_v3  ;;  %v6065_v14 = vld [vmem:[%s7826_s1 + $0xb0] sm:$0xff]   ;;  %v6076_v16 = vld [vmem:[%s7826_s1 + $0xb8] sm:$0xff]   ;;  %v6087_v18 = vld [vmem:[%s7826_s1 + $0xc0] sm:$0xff]  }
   0x7   :  { %2690 = vmatpush1.bf16.msra.mxu0 %v6010_v4  ;;  %2402 = vmatprep.subr.bf16.mxu1 %v5946_v0  ;;  %v5450_v19 = vld [vmem:[%s7827_s0 + $0x4] ss:$36 sps:$4 sm:$0xff]   ;;  %v5453_v21 = vld [vmem:[%s7827_s0 + $0xc] ss:$36 sps:$4 sm:$0xff]   ;;  %v5438_v25 = vld [vmem:[%s7826_s1 + $0x58] sm:$0xff]  }
   0x8   :  { %2691 = vmatprep.subr.bf16.mxu0 %v5946_v0  ;;  %v5434_v20 = vld [vmem:[%s7826_s1 + $0x48] sm:$0xff]   ;;  %2430 = vmatprep.mubr.bf16.mxu1 %v5450_v19  ;;  %v5436_v23 = vld [vmem:[%s7826_s1 + $0x50] sm:$0xff]   ;;  %v6126_v26 = vld [vmem:[%s7826_s1 + $0xd8] sm:$0xff]  }
   0x9   :  { %v6104_v22 = vld [vmem:[%s7826_s1 + $0xc8] sm:$0xff]   ;;  %2719 = vmatprep.mubr.bf16.mxu0 %v5453_v21  ;;  %v6115_v24 = vld [vmem:[%s7826_s1 + $0xd0] sm:$0xff]   ;;  %v5440_v27 = vld [vmem:[%s7826_s1 + $0x60] sm:$0xff]  }
   0xa   :  { %2403 = vmatpush1.bf16.msra.mxu1 %v5420_v5  ;;  %v6137_v28 = vld [vmem:[%s7826_s1 + $0xe0] sm:$0xff]   ;;  %v5442_v29 = vld [vmem:[%s7826_s1 + $0x68] sm:$0xff]   ;;  %v5444_v31 = vld [vmem:[%s7826_s1 + $0x70] sm:$0xff]  }
   0xb   :  { %2692 = vmatpush1.bf16.msra.mxu0 %v6021_v6  ;;  %2404 = vmatprep.subr.bf16.mxu1 %v5946_v0  ;;  %v6148_v30 = vld [vmem:[%s7826_s1 + $0xe8] sm:$0xff]   ;;  %v6159_v32 = vld [vmem:[%s7826_s1 + $0xf0] sm:$0xff]   ;;  %v5446_v33 = vld [vmem:[%s7826_s1 + $0x78] sm:$0xff]  }
   0xc   :  { %2693 = vmatprep.subr.bf16.mxu0 %v5946_v0  ;;  %v6170_v34 = vld [vmem:[%s7826_s1 + $0xf8] sm:$0xff]   ;;  %v5448_v35 = vld [vmem:[%s7827_s0] ss:$36 sps:$4 sm:$0xff]   ;;  %v5451_v36 = vld [vmem:[%s7827_s0 + $0x8] ss:$36 sps:$4 sm:$0xff]  }
   0xd   :  { %v5454_v37 = vld [vmem:[%s7826_s1 + $0x100] sm:$0xff]   ;;  %v5455_v38 = vld [vmem:[%s7827_s0 + $0x4c] ss:$36 sps:$4 sm:$0xff]   ;;  %v5457_v39 = vld [vmem:[%s7827_s0 + $0x54] ss:$36 sps:$4 sm:$0xff]  }
   0xe   :  { %2405 = vmatpush1.bf16.msra.mxu1 %v5422_v7  ;;  %v5459_v40 = vld [vmem:[%s7826_s1 + $0x108] sm:$0xff]   ;;  %v5461_v42 = vld [vmem:[%s7827_s0 + $0x50] ss:$36 sps:$4 sm:$0xff]   ;;  %v5465_v45 = vld [vmem:[%s7827_s0 + $0x9c] ss:$36 sps:$4 sm:$0xff]  }
   0xf   :  { %2694 = vmatpush1.bf16.msra.mxu0 %v6032_v8  ;;  %2406 = vmatprep.subr.bf16.mxu1 %v5946_v0  ;;  %v5460_v41 = vld [vmem:[%s7827_s0 + $0x48] ss:$36 sps:$4 sm:$0xff]   ;;  %v5463_v43 = vld [vmem:[%s7827_s0 + $0x94] ss:$36 sps:$4 sm:$0xff]   ;;  %v5470_v49 = vld [vmem:[%s7827_s0 + $0xdc] ss:$36 sps:$4 sm:$0xff]  }
  0x10   :  { %2695 = vmatprep.subr.bf16.mxu0 %v5946_v0  ;;  %v5462_v44 = vld [vmem:[%s7826_s1 + $0x110] sm:$0xff]   ;;  %v5469_v46 = vld [vmem:[%s7826_s1 + $0x118] sm:$0xff]   ;;  %v5472_v50 = vld [vmem:[%s7827_s0 + $0xe4] ss:$36 sps:$4 sm:$0xff]  }
  0x11   :  { %v5467_v47 = vld [vmem:[%s7827_s0 + $0x90] ss:$36 sps:$4 sm:$0xff]   ;;  %v5468_v48 = vld [vmem:[%s7827_s0 + $0x98] ss:$36 sps:$4 sm:$0xff]   ;;  %v5474_v51 = vld [vmem:[%s7826_s1 + $0x120] sm:$0xff]  }
  0x12   :  { %2407 = vmatpush1.bf16.msra.mxu1 %v5424_v9  ;;  %v5477_v52 = vld [vmem:[%s7826_s1 + $0x128] sm:$0xff]   ;;  %v5475_v53 = vld [vmem:[%s7827_s0 + $0xd8] ss:$36 sps:$4 sm:$0xff]   ;;  %v5476_v54 = vld [vmem:[%s7827_s0 + $0xe0] ss:$36 sps:$4 sm:$0xff]  }
  0x13   :  { %2696 = vmatpush1.bf16.msra.mxu0 %v6043_v10  ;;  %2408 = vmatprep.subr.bf16.mxu1 %v5946_v0  ;;  %v5478_v55 = vld [vmem:[%s7827_s0 + $0x124] ss:$36 sps:$4 sm:$0xff]   ;;  %v5480_v56 = vld [vmem:[%s7827_s0 + $0x12c] ss:$36 sps:$4 sm:$0xff]   ;;  %v5491_v58 = vld [vmem:[%s7826_s1 + $0x138] sm:$0xff]  }
  0x14   :  { %2697 = vmatprep.subr.bf16.mxu0 %v5946_v0  ;;  %v5484_v57 = vld [vmem:[%s7826_s1 + $0x130] sm:$0xff]   ;;  %v5482_v59 = vld [vmem:[%s7827_s0 + $0x120] ss:$36 sps:$4 sm:$0xff]   ;;  %v5483_v60 = vld [vmem:[%s7827_s0 + $0x128] ss:$36 sps:$4 sm:$0xff]  }
  0x15   :  { %v5485_v61 = vld [vmem:[%s7827_s0 + $0x16c] ss:$36 sps:$4 sm:$0xff]   ;;  %v5487_v62 = vld [vmem:[%s7827_s0 + $0x174] ss:$36 sps:$4 sm:$0xff]   ;;  %v5492_v63 = vld [vmem:[%s7826_s1 + $0x140] sm:$0xff]  }
  0x16   :  { %2409 = vmatpush1.bf16.msra.mxu1 %v5426_v11  ;;  %v5499_v1 = vld [vmem:[%s7826_s1 + $0x148] sm:$0xff]   ;;  %v5490_v3 = vld [vmem:[%s7827_s0 + $0x170] ss:$36 sps:$4 sm:$0xff]   ;;  %v5495_v5 = vld [vmem:[%s7827_s0 + $0x1bc] ss:$36 sps:$4 sm:$0xff]  }
  0x17   :  { %2698 = vmatpush1.bf16.msra.mxu0 %v6054_v12  ;;  %2410 = vmatprep.subr.bf16.mxu1 %v5946_v0  ;;  %v5507_v7 = vld [vmem:[%s7826_s1 + $0x158] sm:$0xff]   ;;  %v5502_v11 = vld [vmem:[%s7827_s0 + $0x204] ss:$36 sps:$4 sm:$0xff]  }
  0x18   :  { %2699 = vmatprep.subr.bf16.mxu0 %v5946_v0  ;;  %v5498_v9 = vld [vmem:[%s7827_s0 + $0x1b8] ss:$36 sps:$4 sm:$0xff]   ;;  %v5512_v19 = vld [vmem:[%s7827_s0 + $0x240] ss:$36 sps:$4 sm:$0xff]   ;;  %v5513_v21 = vld [vmem:[%s7827_s0 + $0x248] ss:$36 sps:$4 sm:$0xff]  }
  0x1a   :  { %2411 = vmatpush1.bf16.msra.mxu1 %v5428_v13  ;;  %v5504_v13 = vld [vmem:[%s7827_s0 + $0x1f8] ss:$36 sps:$4 sm:$0xff]  }
  0x1b   :  { %2700 = vmatpush1.bf16.msra.mxu0 %v6065_v14  ;;  %2412 = vmatprep.subr.bf16.mxu1 %v5946_v0 }
  0x1c   :  { %2701 = vmatprep.subr.bf16.mxu0 %v5946_v0 }
  0x1e   :  { %2413 = vmatpush1.bf16.msra.mxu1 %v5430_v15  ;;  %v5505_v15 = vld [vmem:[%s7827_s0 + $0x200] ss:$36 sps:$4 sm:$0xff]  }
  0x1f   :  { %2702 = vmatpush1.bf16.msra.mxu0 %v6076_v16  ;;  %2414 = vmatprep.subr.bf16.mxu1 %v5946_v0 }
  0x20   :  { %2703 = vmatprep.subr.bf16.mxu0 %v5946_v0 }
  0x22   :  { %2415 = vmatpush1.bf16.msra.mxu1 %v5432_v17  ;;  %v5510_v17 = vld [vmem:[%s7827_s0 + $0x24c] ss:$36 sps:$4 sm:$0xff]  }
  0x23   :  { %2704 = vmatpush1.bf16.msra.mxu0 %v6087_v18  ;;  %2416 = vmatprep.subr.bf16.mxu1 %v5946_v0 }
  0x24   :  { %2705 = vmatprep.subr.bf16.mxu0 %v5946_v0 }
  0x26   :  { %2417 = vmatpush1.bf16.msra.mxu1 %v5434_v20  ;;  %v5529_v20 = vld [vmem:[%s7826_s1 + $0x178] sm:$0xff]  }
  0x27   :  { %2706 = vmatpush1.bf16.msra.mxu0 %v6104_v22  ;;  %2418 = vmatprep.subr.bf16.mxu1 %v5946_v0 }
  0x28   :  { %2707 = vmatprep.subr.bf16.mxu0 %v5946_v0 }
  0x2a   :  { %2419 = vmatpush1.bf16.msra.mxu1 %v5436_v23  ;;  %v5517_v23 = vld [vmem:[%s7827_s0 + $0x294] ss:$36 sps:$4 sm:$0xff]  }
  0x2b   :  { %2708 = vmatpush1.bf16.msra.mxu0 %v6115_v24  ;;  %2420 = vmatprep.subr.bf16.mxu1 %v5946_v0 }
  0x2c   :  { %2709 = vmatprep.subr.bf16.mxu0 %v5946_v0 }
  0x2e   :  { %2421 = vmatpush1.bf16.msra.mxu1 %v5438_v25  ;;  %v5520_v25 = vld [vmem:[%s7827_s0 + $0x290] ss:$36 sps:$4 sm:$0xff]  }
  0x2f   :  { %2710 = vmatpush1.bf16.msra.mxu0 %v6126_v26  ;;  %2422 = vmatprep.subr.bf16.mxu1 %v5946_v0 }
  0x30   :  { %2711 = vmatprep.subr.bf16.mxu0 %v5946_v0 }
  0x32   :  { %2423 = vmatpush1.bf16.msra.mxu1 %v5440_v27  ;;  %v5525_v27 = vld [vmem:[%s7827_s0 + $0x2dc] ss:$36 sps:$4 sm:$0xff]  }
  0x33   :  { %2712 = vmatpush1.bf16.msra.mxu0 %v6137_v28  ;;  %2424 = vmatprep.subr.bf16.mxu1 %v5946_v0 }
  0x34   :  { %2713 = vmatprep.subr.bf16.mxu0 %v5946_v0 }
  0x36   :  { %2425 = vmatpush1.bf16.msra.mxu1 %v5442_v29  ;;  %v5528_v29 = vld [vmem:[%s7827_s0 + $0x2d8] ss:$36 sps:$4 sm:$0xff]  }
  0x37   :  { %2714 = vmatpush1.bf16.msra.mxu0 %v6148_v30  ;;  %2426 = vmatprep.subr.bf16.mxu1 %v5946_v0 }
  0x38   :  { %2715 = vmatprep.subr.bf16.mxu0 %v5946_v0 }
  0x3a   :  { %2427 = vmatpush1.bf16.msra.mxu1 %v5444_v31  ;;  %v5534_v31 = vld [vmem:[%s7827_s0 + $0x14] ss:$36 sps:$4 sm:$0xff]  }
  0x3b   :  { %2716 = vmatpush1.bf16.msra.mxu0 %v6159_v32  ;;  %2428 = vmatprep.subr.bf16.mxu1 %v5946_v0 }
  0x3c   :  { %2717 = vmatprep.subr.bf16.mxu0 %v5946_v0 }
  0x3e   :  { %2429 = vmatpush1.bf16.msra.mxu1 %v5446_v33  ;;  %v5532_v33 = vld [vmem:[%s7827_s0 + $0x10] ss:$36 sps:$4 sm:$0xff]  }
  0x3f   :  { %2718 = vmatpush1.bf16.msra.mxu0 %v6170_v34  ;;  %5063 = vmatprep.subr.bf16.mxu1 %v5946_v0 }
  0x40   :  { %2976 = vmatprep.subr.bf16.mxu0 %v5946_v0 }
  0x41   :  { %2431 = vmatmul.mubr.bf16.vlgmr.msra.gmra.mrb[0].mxu1 %v5448_v35  ;;  %v5536_v35 = vld [vmem:[%s7826_s1 + $0x180] sm:$0xff]  }
  0x42   :  { %2720 = vmatmul.mubr.bf16.vlgmr.msra.gmra.mrb[0].mxu0 %v5451_v36  ;;  %2438 = vmatprep.mubr.bf16.mxu1 %v5455_v38  ;;  %v5539_v36 = vld [vmem:[%s7827_s0 + $0x5c] ss:$36 sps:$4 sm:$0xff]   ;;  %v5549_v38 = vld [vmem:[%s7826_s1 + $0x188] sm:$0xff]  }
  0x43   :  { %2977 = vmatpush1.bf16.msra.mxu0 %v5454_v37  ;;  %2727 = vmatprep.mubr.bf16.mxu0 %v5457_v39  ;;  %v5541_v37 = vld [vmem:[%s7827_s0 + $0x360] ss:$36 sps:$4 sm:$0xff]   ;;  %v5542_v39 = vld [vmem:[%s7827_s0 + $0x58] ss:$36 sps:$4 sm:$0xff]  }
  0x44   :  { %2978 = vmatprep.subr.bf16.mxu0 %v5946_v0  ;;  %5079 = vmatpush1.bf16.msra.mxu1 %v6000_v2  ;;  %v5489_v2 = vld [vmem:[%s7827_s0 + $0x168] ss:$36 sps:$4 sm:$0xff]  }
  0x45   :  { %5064 = vmatprep.subr.bf16.mxu1 %v5946_v0 }
  0x47   :  { %2979 = vmatpush1.bf16.msra.mxu0 %v5459_v40  ;;  %v5543_v40 = vld [vmem:[%s7827_s0 + $0x3ac] ss:$36 sps:$4 sm:$0xff]  }
  0x48   :  { %2980 = vmatprep.subr.bf16.mxu0 %v5946_v0  ;;  %5080 = vmatpush1.bf16.msra.mxu1 %v6010_v4  ;;  %v5493_v4 = vld [vmem:[%s7827_s0 + $0x1b4] ss:$36 sps:$4 sm:$0xff]  }
  0x49   :  { %2439 = vmatmul.mubr.bf16.gmra.mrb[4].mxu1 %v5460_v41  ;;  %5065 = vmatprep.subr.bf16.mxu1 %v5946_v0  ;;  %v5545_v41 = vld [vmem:[%s7827_s0 + $0xa4] ss:$36 sps:$4 sm:$0xff]  }
  0x4a   :  { %2728 = vmatmul.mubr.bf16.gmra.mrb[4].mxu0 %v5461_v42  ;;  %2446 = vmatprep.mubr.bf16.mxu1 %v5463_v43  ;;  %v5562_v42 = vld [vmem:[%s7826_s1 + $0x190] sm:$0xff]   ;;  %v5547_v43 = vld [vmem:[%s7827_s0 + $0x3a8] ss:$36 sps:$4 sm:$0xff]  }
  0x4b   :  { %2981 = vmatpush1.bf16.msra.mxu0 %v5462_v44  ;;  %2735 = vmatprep.mubr.bf16.mxu0 %v5465_v45  ;;  %v5575_v44 = vld [vmem:[%s7826_s1 + $0x198] sm:$0xff]   ;;  %v5548_v45 = vld [vmem:[%s7827_s0 + $0xa0] ss:$36 sps:$4 sm:$0xff]  }
  0x4c   :  { %2982 = vmatprep.subr.bf16.mxu0 %v5946_v0  ;;  %5081 = vmatpush1.bf16.msra.mxu1 %v6021_v6  ;;  %v5506_v6 = vld [vmem:[%s7826_s1 + $0x150] sm:$0xff]  }
  0x4d   :  { %5066 = vmatprep.subr.bf16.mxu1 %v5946_v0 }
  0x4f   :  { %2983 = vmatpush1.bf16.msra.mxu0 %v5469_v46  ;;  %v5550_v46 = vld [vmem:[%s7827_s0 + $0x3f4] ss:$36 sps:$4 sm:$0xff]  }
  0x50   :  { %2984 = vmatprep.subr.bf16.mxu0 %v5946_v0  ;;  %5082 = vmatpush1.bf16.msra.mxu1 %v6032_v8  ;;  %v5497_v8 = vld [vmem:[%s7827_s0 + $0x1b0] ss:$36 sps:$4 sm:$0xff]  }
  0x51   :  { %2447 = vmatmul.mubr.bf16.gmra.mrb[8].mxu1 %v5467_v47  ;;  %5067 = vmatprep.subr.bf16.mxu1 %v5946_v0  ;;  %v5552_v47 = vld [vmem:[%s7827_s0 + $0xec] ss:$36 sps:$4 sm:$0xff]  }
  0x52   :  { %2736 = vmatmul.mubr.bf16.gmra.mrb[8].mxu0 %v5468_v48  ;;  %2454 = vmatprep.mubr.bf16.mxu1 %v5470_v49  ;;  %v5588_v48 = vld [vmem:[%s7826_s1 + $0x1a0] sm:$0xff]   ;;  %v5554_v49 = vld [vmem:[%s7827_s0 + $0x3f0] ss:$36 sps:$4 sm:$0xff]  }
  0x53   :  { %2743 = vmatprep.mubr.bf16.mxu0 %v5472_v50  ;;  %2985 = vmatpush1.bf16.msra.mxu0 %v5474_v51  ;;  %v5601_v50 = vld [vmem:[%s7826_s1 + $0x1a8] sm:$0xff]  }
  0x54   :  { %2986 = vmatprep.subr.bf16.mxu0 %v5946_v0  ;;  %5083 = vmatpush1.bf16.msra.mxu1 %v6043_v10  ;;  %v5500_v10 = vld [vmem:[%s7827_s0 + $0x1fc] ss:$36 sps:$4 sm:$0xff]   ;;  %v5555_v51 = vld [vmem:[%s7827_s0 + $0xe8] ss:$36 sps:$4 sm:$0xff]  }
  0x55   :  { %5068 = vmatprep.subr.bf16.mxu1 %v5946_v0 }
  0x57   :  { %2987 = vmatpush1.bf16.msra.mxu0 %v5477_v52  ;;  %v5556_v52 = vld [vmem:[%s7827_s0 + $0x43c] ss:$36 sps:$4 sm:$0xff]  }
  0x58   :  { %2988 = vmatprep.subr.bf16.mxu0 %v5946_v0  ;;  %5084 = vmatpush1.bf16.msra.mxu1 %v6054_v12  ;;  %v5514_v12 = vld [vmem:[%s7826_s1 + $0x160] sm:$0xff]  }
  0x59   :  { %2455 = vmatmul.mubr.bf16.gmra.mrb[12].mxu1 %v5475_v53  ;;  %5069 = vmatprep.subr.bf16.mxu1 %v5946_v0  ;;  %v5558_v53 = vld [vmem:[%s7827_s0 + $0x134] ss:$36 sps:$4 sm:$0xff]  }
  0x5a   :  { %2744 = vmatmul.mubr.bf16.gmra.mrb[12].mxu0 %v5476_v54  ;;  %2462 = vmatprep.mubr.bf16.mxu1 %v5478_v55  ;;  %v5614_v54 = vld [vmem:[%s7826_s1 + $0x1b0] sm:$0xff]   ;;  %v5560_v55 = vld [vmem:[%s7827_s0 + $0x438] ss:$36 sps:$4 sm:$0xff]  }
  0x5b   :  { %2751 = vmatprep.mubr.bf16.mxu0 %v5480_v56  ;;  %2989 = vmatpush1.bf16.msra.mxu0 %v5484_v57  ;;  %v5627_v56 = vld [vmem:[%s7826_s1 + $0x1b8] sm:$0xff]   ;;  %v5561_v57 = vld [vmem:[%s7827_s0 + $0x130] ss:$36 sps:$4 sm:$0xff]  }
  0x5c   :  { %2990 = vmatprep.subr.bf16.mxu0 %v5946_v0  ;;  %5085 = vmatpush1.bf16.msra.mxu1 %v6065_v14  ;;  %v5521_v14 = vld [vmem:[%s7826_s1 + $0x168] sm:$0xff]  }
  0x5d   :  { %5070 = vmatprep.subr.bf16.mxu1 %v5946_v0 }
  0x5f   :  { %2991 = vmatpush1.bf16.msra.mxu0 %v5491_v58  ;;  %v5563_v58 = vld [vmem:[%s7827_s0 + $0x484] ss:$36 sps:$4 sm:$0xff]  }
  0x60   :  { %2992 = vmatprep.subr.bf16.mxu0 %v5946_v0  ;;  %5086 = vmatpush1.bf16.msra.mxu1 %v6076_v16  ;;  %v5508_v16 = vld [vmem:[%s7827_s0 + $0x244] ss:$36 sps:$4 sm:$0xff]  }
  0x61   :  { %2463 = vmatmul.mubr.bf16.gmra.mrb[16].mxu1 %v5482_v59  ;;  %5071 = vmatprep.subr.bf16.mxu1 %v5946_v0  ;;  %v5565_v59 = vld [vmem:[%s7827_s0 + $0x17c] ss:$36 sps:$4 sm:$0xff]  }
  0x62   :  { %2752 = vmatmul.mubr.bf16.gmra.mrb[16].mxu0 %v5483_v60  ;;  %2470 = vmatprep.mubr.bf16.mxu1 %v5485_v61  ;;  %v5640_v60 = vld [vmem:[%s7826_s1 + $0x1c0] sm:$0xff]  }
  0x63   :  { %2759 = vmatprep.mubr.bf16.mxu0 %v5487_v62  ;;  %2993 = vmatpush1.bf16.msra.mxu0 %v5492_v63  ;;  %v5567_v61 = vld [vmem:[%s7827_s0 + $0x480] ss:$36 sps:$4 sm:$0xff]   ;;  %v5653_v62 = vld [vmem:[%s7826_s1 + $0x1c8] sm:$0xff]   ;;  %v5568_v63 = vld [vmem:[%s7827_s0 + $0x178] ss:$36 sps:$4 sm:$0xff]  }
  0x64   :  { %2994 = vmatprep.subr.bf16.mxu0 %v5946_v0  ;;  %5087 = vmatpush1.bf16.msra.mxu1 %v6087_v18  ;;  %v5522_v18 = vld [vmem:[%s7826_s1 + $0x170] sm:$0xff]  }
  0x65   :  { %5072 = vmatprep.subr.bf16.mxu1 %v5946_v0 }
  0x67   :  { %2995 = vmatpush1.bf16.msra.mxu0 %v5499_v1  ;;  %v5569_v1 = vld [vmem:[%s7827_s0 + $0x4cc] ss:$36 sps:$4 sm:$0xff]  }
  0x68   :  { %2996 = vmatprep.subr.bf16.mxu0 %v5946_v0  ;;  %5088 = vmatpush1.bf16.msra.mxu1 %v6104_v22  ;;  %v5515_v22 = vld [vmem:[%s7827_s0 + $0x28c] ss:$36 sps:$4 sm:$0xff]  }
  0x69   :  { %2471 = vmatmul.mubr.bf16.gmra.mrb[20].mxu1 %v5489_v2  ;;  %5073 = vmatprep.subr.bf16.mxu1 %v5946_v0  ;;  %v5571_v2 = vld [vmem:[%s7827_s0 + $0x1c4] ss:$36 sps:$4 sm:$0xff]  }
  0x6a   :  { %2760 = vmatmul.mubr.bf16.gmra.mrb[20].mxu0 %v5490_v3  ;;  %2478 = vmatprep.mubr.bf16.mxu1 %v5493_v4  ;;  %v5666_v3 = vld [vmem:[%s7826_s1 + $0x1d0] sm:$0xff]   ;;  %v5573_v4 = vld [vmem:[%s7827_s0 + $0x4c8] ss:$36 sps:$4 sm:$0xff]  }
  0x6b   :  { %2767 = vmatprep.mubr.bf16.mxu0 %v5495_v5  ;;  %2997 = vmatpush1.bf16.msra.mxu0 %v5506_v6  ;;  %v5574_v5 = vld [vmem:[%s7827_s0 + $0x1c0] ss:$36 sps:$4 sm:$0xff]   ;;  %v5576_v6 = vld [vmem:[%s7827_s0 + $0x514] ss:$36 sps:$4 sm:$0xff]  }
  0x6c   :  { %2998 = vmatprep.subr.bf16.mxu0 %v5946_v0  ;;  %5089 = vmatpush1.bf16.msra.mxu1 %v6115_v24  ;;  %v5519_v24 = vld [vmem:[%s7827_s0 + $0x288] ss:$36 sps:$4 sm:$0xff]  }
  0x6d   :  { %5074 = vmatprep.subr.bf16.mxu1 %v5946_v0 }
  0x6f   :  { %2999 = vmatpush1.bf16.msra.mxu0 %v5507_v7  ;;  %v5578_v7 = vld [vmem:[%s7827_s0 + $0x20c] ss:$36 sps:$4 sm:$0xff]  }
  0x70   :  { %3000 = vmatprep.subr.bf16.mxu0 %v5946_v0  ;;  %5090 = vmatpush1.bf16.msra.mxu1 %v6126_v26  ;;  %v5523_v26 = vld [vmem:[%s7827_s0 + $0x2d4] ss:$36 sps:$4 sm:$0xff]  }
  0x71   :  { %2479 = vmatmul.mubr.bf16.gmra.mrb[24].mxu1 %v5497_v8  ;;  %5075 = vmatprep.subr.bf16.mxu1 %v5946_v0  ;;  %v5679_v8 = vld [vmem:[%s7826_s1 + $0x1d8] sm:$0xff]  }
  0x72   :  { %2768 = vmatmul.mubr.bf16.gmra.mrb[24].mxu0 %v5498_v9  ;;  %2486 = vmatprep.mubr.bf16.mxu1 %v5500_v10  ;;  %v5580_v9 = vld [vmem:[%s7827_s0 + $0x510] ss:$36 sps:$4 sm:$0xff]   ;;  %v5581_v10 = vld [vmem:[%s7827_s0 + $0x208] ss:$36 sps:$4 sm:$0xff]  }
  0x73   :  { %2775 = vmatprep.mubr.bf16.mxu0 %v5502_v11  ;;  %3001 = vmatpush1.bf16.msra.mxu0 %v5514_v12  ;;  %v5582_v11 = vld [vmem:[%s7827_s0 + $0x55c] ss:$36 sps:$4 sm:$0xff]   ;;  %v5584_v12 = vld [vmem:[%s7827_s0 + $0x254] ss:$36 sps:$4 sm:$0xff]  }
  0x74   :  { %3002 = vmatprep.subr.bf16.mxu0 %v5946_v0  ;;  %5091 = vmatpush1.bf16.msra.mxu1 %v6137_v28  ;;  %v5527_v28 = vld [vmem:[%s7827_s0 + $0x2d0] ss:$36 sps:$4 sm:$0xff]  }
  0x75   :  { %5076 = vmatprep.subr.bf16.mxu1 %v5946_v0 }
  0x77   :  { %3003 = vmatpush1.bf16.msra.mxu0 %v5521_v14  ;;  %v5587_v14 = vld [vmem:[%s7827_s0 + $0x250] ss:$36 sps:$4 sm:$0xff]  }
  0x78   :  { %3004 = vmatprep.subr.bf16.mxu0 %v5946_v0  ;;  %5092 = vmatpush1.bf16.msra.mxu1 %v6148_v30  ;;  %v5530_v30 = vld [vmem:[%s7827_s0 + $0x31c] ss:$36 sps:$4 sm:$0xff]  }
  0x79   :  { %2487 = vmatmul.mubr.bf16.gmra.mrb[28].mxu1 %v5504_v13  ;;  %5077 = vmatprep.subr.bf16.mxu1 %v5946_v0  ;;  %v5586_v13 = vld [vmem:[%s7827_s0 + $0x558] ss:$36 sps:$4 sm:$0xff]  }
  0x7a   :  { %2776 = vmatmul.mubr.bf16.gmra.mrb[28].mxu0 %v5505_v15  ;;  %2494 = vmatprep.mubr.bf16.mxu1 %v5508_v16  ;;  %v5589_v15 = vld [vmem:[%s7827_s0 + $0x5a4] ss:$36 sps:$4 sm:$0xff]   ;;  %v5591_v16 = vld [vmem:[%s7827_s0 + $0x29c] ss:$36 sps:$4 sm:$0xff]  }
  0x7b   :  { %2783 = vmatprep.mubr.bf16.mxu0 %v5510_v17  ;;  %3005 = vmatpush1.bf16.msra.mxu0 %v5522_v18  ;;  %v5692_v17 = vld [vmem:[%s7826_s1 + $0x1e0] sm:$0xff]  }
  0x7c   :  { %3006 = vmatprep.subr.bf16.mxu0 %v5946_v0  ;;  %5093 = vmatpush1.bf16.msra.mxu1 %v6159_v32  ;;  %v5535_v32 = vld [vmem:[%s7827_s0 + $0x318] ss:$36 sps:$4 sm:$0xff]   ;;  %v5593_v18 = vld [vmem:[%s7827_s0 + $0x5a0] ss:$36 sps:$4 sm:$0xff]  }
  0x7d   :  { %5078 = vmatprep.subr.bf16.mxu1 %v5946_v0 }
  0x7f   :  { %3007 = vmatpush1.bf16.msra.mxu0 %v5529_v20  ;;  %v5595_v20 = vld [vmem:[%s7827_s0 + $0x5ec] ss:$36 sps:$4 sm:$0xff]  }
  0x80   :  { %3265 = vmatprep.subr.bf16.mxu0 %v5946_v0  ;;  %5094 = vmatpush1.bf16.msra.mxu1 %v6170_v34  ;;  %v5537_v34 = vld [vmem:[%s7827_s0 + $0x364] ss:$36 sps:$4 sm:$0xff]  }
  0x81   :  { %2495 = vmatmul.mubr.bf16.gmra.mrb[32].mxu1 %v5512_v19  ;;  %v5594_v19 = vld [vmem:[%s7827_s0 + $0x298] ss:$36 sps:$4 sm:$0xff]  }
  0x82   :  { %2784 = vmatmul.mubr.bf16.gmra.mrb[32].mxu0 %v5513_v21  ;;  %2502 = vmatprep.mubr.bf16.mxu1 %v5515_v22  ;;  %v5597_v21 = vld [vmem:[%s7827_s0 + $0x2e4] ss:$36 sps:$4 sm:$0xff]  }
  0x83   :  { %2791 = vmatprep.mubr.bf16.mxu0 %v5517_v23  ;;  %v5599_v22 = vld [vmem:[%s7827_s0 + $0x5e8] ss:$36 sps:$4 sm:$0xff]   ;;  %v5600_v23 = vld [vmem:[%s7827_s0 + $0x2e0] ss:$36 sps:$4 sm:$0xff]  }
  0x89   :  { %2503 = vmatmul.mubr.bf16.gmra.mrb[36].mxu1 %v5519_v24  ;;  %v5602_v24 = vld [vmem:[%s7827_s0 + $0x634] ss:$36 sps:$4 sm:$0xff]  }
  0x8a   :  { %2792 = vmatmul.mubr.bf16.gmra.mrb[36].mxu0 %v5520_v25  ;;  %2510 = vmatprep.mubr.bf16.mxu1 %v5523_v26  ;;  %v5604_v25 = vld [vmem:[%s7827_s0 + $0x32c] ss:$36 sps:$4 sm:$0xff]  }
  0x8b   :  { %2799 = vmatprep.mubr.bf16.mxu0 %v5525_v27  ;;  %v5705_v26 = vld [vmem:[%s7826_s1 + $0x1e8] sm:$0xff]   ;;  %v6593_v27 = vld [vmem:[%s7826_s1 + $0x200] sm:$0xff]  }
  0x8c   :  { %4983 = vmatprep.subr.bf16.mxu1 %v6593_v27 }
  0x91   :  { %2511 = vmatmul.mubr.bf16.gmra.mrb[40].mxu1 %v5527_v28  ;;  %v5606_v28 = vld [vmem:[%s7827_s0 + $0x630] ss:$36 sps:$4 sm:$0xff]  }
  0x92   :  { %2800 = vmatmul.mubr.bf16.gmra.mrb[40].mxu0 %v5528_v29  ;;  %2518 = vmatprep.mubr.bf16.mxu1 %v5530_v30  ;;  %v5607_v29 = vld [vmem:[%s7827_s0 + $0x328] ss:$36 sps:$4 sm:$0xff]   ;;  %v5608_v30 = vld [vmem:[%s7827_s0 + $0x67c] ss:$36 sps:$4 sm:$0xff]  }
  0x93   :  { %3008 = vmatprep.mubr.bf16.mxu0 %v5534_v31  ;;  %v5610_v31 = vld [vmem:[%s7827_s0 + $0x374] ss:$36 sps:$4 sm:$0xff]  }
  0x99   :  { %2519 = vmatmul.mubr.bf16.gmra.mrb[44].mxu1 %v5535_v32  ;;  %v5612_v32 = vld [vmem:[%s7827_s0 + $0x678] ss:$36 sps:$4 sm:$0xff]  }
  0x9a   :  { %3009 = vmatmul.mubr.bf16.vlgmr.msra.gmra.mrb[0].mxu0 %v5532_v33  ;;  %2526 = vmatprep.mubr.bf16.mxu1 %v5537_v34  ;;  %v5613_v33 = vld [vmem:[%s7827_s0 + $0x370] ss:$36 sps:$4 sm:$0xff]   ;;  %v5615_v34 = vld [vmem:[%s7827_s0 + $0x6c4] ss:$36 sps:$4 sm:$0xff]  }
  0x9b   :  { %3266 = vmatpush1.bf16.msra.mxu0 %v5536_v35  ;;  %3016 = vmatprep.mubr.bf16.mxu0 %v5539_v36  ;;  %v5617_v35 = vld [vmem:[%s7827_s0 + $0x3bc] ss:$36 sps:$4 sm:$0xff]   ;;  %v5719_v36 = vld [vmem:[%s7826_s1 + $0x1f0] sm:$0xff]  }
  0x9c   :  { %3267 = vmatprep.subr.bf16.mxu0 %v5946_v0 }
  0x9f   :  { %3268 = vmatpush1.bf16.msra.mxu0 %v5549_v38  ;;  %v5620_v38 = vld [vmem:[%s7827_s0 + $0x3b8] ss:$36 sps:$4 sm:$0xff]  }
  0xa0   :  { %3269 = vmatprep.subr.bf16.mxu0 %v5946_v0 }
  0xa1   :  { %2527 = vmatmul.mubr.bf16.gmra.mrb[48].mxu1 %v5541_v37  ;;  %v5619_v37 = vld [vmem:[%s7827_s0 + $0x6c0] ss:$36 sps:$4 sm:$0xff]  }
  0xa2   :  { %3017 = vmatmul.mubr.bf16.gmra.mrb[4].mxu0 %v5542_v39  ;;  %2534 = vmatprep.mubr.bf16.mxu1 %v5543_v40  ;;  %v5621_v39 = vld [vmem:[%s7827_s0 + $0x70c] ss:$36 sps:$4 sm:$0xff]   ;;  %v5623_v40 = vld [vmem:[%s7827_s0 + $0x404] ss:$36 sps:$4 sm:$0xff]  }
  0xa3   :  { %3024 = vmatprep.mubr.bf16.mxu0 %v5545_v41  ;;  %3270 = vmatpush1.bf16.msra.mxu0 %v5562_v42  ;;  %v5625_v41 = vld [vmem:[%s7827_s0 + $0x708] ss:$36 sps:$4 sm:$0xff]   ;;  %v5626_v42 = vld [vmem:[%s7827_s0 + $0x400] ss:$36 sps:$4 sm:$0xff]  }
  0xa4   :  { %3271 = vmatprep.subr.bf16.mxu0 %v5946_v0 }
  0xa7   :  { %3272 = vmatpush1.bf16.msra.mxu0 %v5575_v44  ;;  %v5630_v44 = vld [vmem:[%s7827_s0 + $0x44c] ss:$36 sps:$4 sm:$0xff]  }
  0xa8   :  { %3273 = vmatprep.subr.bf16.mxu0 %v5946_v0 }
  0xa9   :  { %2535 = vmatmul.mubr.bf16.gmra.mrb[52].mxu1 %v5547_v43  ;;  %v5628_v43 = vld [vmem:[%s7827_s0 + $0x754] ss:$36 sps:$4 sm:$0xff]  }
  0xaa   :  { %3025 = vmatmul.mubr.bf16.gmra.mrb[8].mxu0 %v5548_v45  ;;  %2542 = vmatprep.mubr.bf16.mxu1 %v5550_v46  ;;  %v5733_v45 = vld [vmem:[%s7826_s1 + $0x1f8] sm:$0xff]   ;;  %v5632_v46 = vld [vmem:[%s7827_s0 + $0x750] ss:$36 sps:$4 sm:$0xff]  }
  0xab   :  { %3032 = vmatprep.mubr.bf16.mxu0 %v5552_v47  ;;  %3274 = vmatpush1.bf16.msra.mxu0 %v5588_v48  ;;  %v5633_v47 = vld [vmem:[%s7827_s0 + $0x448] ss:$36 sps:$4 sm:$0xff]   ;;  %v5634_v48 = vld [vmem:[%s7827_s0 + $0x79c] ss:$36 sps:$4 sm:$0xff]  }
  0xac   :  { %3275 = vmatprep.subr.bf16.mxu0 %v5946_v0 }
  0xaf   :  { %3276 = vmatpush1.bf16.msra.mxu0 %v5601_v50 }
  0xb0   :  { %3277 = vmatprep.subr.bf16.mxu0 %v5946_v0 }
  0xb1   :  { %2543 = vmatmul.mubr.bf16.gmra.mrb[56].mxu1 %v5554_v49  ;;  %v5636_v49 = vld [vmem:[%s7827_s0 + $0x494] ss:$36 sps:$4 sm:$0xff]  }
  0xb2   :  { %3033 = vmatmul.mubr.bf16.gmra.mrb[12].mxu0 %v5555_v51  ;;  %2550 = vmatprep.mubr.bf16.mxu1 %v5556_v52  ;;  %v5638_v51 = vld [vmem:[%s7827_s0 + $0x798] ss:$36 sps:$4 sm:$0xff]  }
  0xb3   :  { %3040 = vmatprep.mubr.bf16.mxu0 %v5558_v53  ;;  %3278 = vmatpush1.bf16.msra.mxu0 %v5614_v54  ;;  %v5639_v53 = vld [vmem:[%s7827_s0 + $0x490] ss:$36 sps:$4 sm:$0xff]   ;;  %v5641_v54 = vld [vmem:[%s7827_s0 + $0x7e4] ss:$36 sps:$4 sm:$0xff]  }
  0xb4   :  { %3279 = vmatprep.subr.bf16.mxu0 %v5946_v0 }
  0xb7   :  { %3280 = vmatpush1.bf16.msra.mxu0 %v5627_v56  ;;  %v5643_v56 = vld [vmem:[%s7827_s0 + $0x4dc] ss:$36 sps:$4 sm:$0xff]  }
  0xb8   :  { %3281 = vmatprep.subr.bf16.mxu0 %v5946_v0 }
  0xb9   :  { %2551 = vmatmul.mubr.bf16.gmra.mrb[60].mxu1 %v5560_v55 }
  0xba   :  { %3041 = vmatmul.mubr.bf16.gmra.mrb[16].mxu0 %v5561_v57  ;;  %2558 = vmatprep.mubr.bf16.mxu1 %v5563_v58 }
  0xbb   :  { %3048 = vmatprep.mubr.bf16.mxu0 %v5565_v59  ;;  %3282 = vmatpush1.bf16.msra.mxu0 %v5640_v60  ;;  %v5645_v59 = vld [vmem:[%s7827_s0 + $0x7e0] ss:$36 sps:$4 sm:$0xff]  }
  0xbc   :  { %3283 = vmatprep.subr.bf16.mxu0 %v5946_v0 }
  0xbf   :  { %3284 = vmatpush1.bf16.msra.mxu0 %v5653_v62  ;;  %v5647_v62 = vld [vmem:[%s7827_s0 + $0x82c] ss:$36 sps:$4 sm:$0xff]  }
  0xc0   :  { %3285 = vmatprep.subr.bf16.mxu0 %v5946_v0 }
  0xc1   :  { %2559 = vmatmul.mubr.bf16.gmra.mrb[64].mxu1 %v5567_v61  ;;  %v5646_v61 = vld [vmem:[%s7827_s0 + $0x4d8] ss:$36 sps:$4 sm:$0xff]  }
  0xc2   :  { %3049 = vmatmul.mubr.bf16.gmra.mrb[20].mxu0 %v5568_v63  ;;  %2566 = vmatprep.mubr.bf16.mxu1 %v5569_v1  ;;  %v5649_v1 = vld [vmem:[%s7827_s0 + $0x524] ss:$36 sps:$4 sm:$0xff]  }
  0xc3   :  { %3056 = vmatprep.mubr.bf16.mxu0 %v5571_v2  ;;  %3286 = vmatpush1.bf16.msra.mxu0 %v5666_v3 }
  0xc4   :  { %3287 = vmatprep.subr.bf16.mxu0 %v5946_v0 }
  0xc7   :  { %3288 = vmatpush1.bf16.msra.mxu0 %v5679_v8 }
  0xc8   :  { %3289 = vmatprep.subr.bf16.mxu0 %v5946_v0 }
  0xc9   :  { %2567 = vmatmul.mubr.bf16.gmra.mrb[68].mxu1 %v5573_v4  ;;  %v5651_v4 = vld [vmem:[%s7827_s0 + $0x828] ss:$36 sps:$4 sm:$0xff]  }
  0xca   :  { %3057 = vmatmul.mubr.bf16.gmra.mrb[24].mxu0 %v5574_v5  ;;  %2574 = vmatprep.mubr.bf16.mxu1 %v5576_v6  ;;  %v5652_v6 = vld [vmem:[%s7827_s0 + $0x520] ss:$36 sps:$4 sm:$0xff]  }
  0xcb   :  { %3064 = vmatprep.mubr.bf16.mxu0 %v5578_v7  ;;  %3290 = vmatpush1.bf16.msra.mxu0 %v5692_v17  ;;  %v5654_v7 = vld [vmem:[%s7827_s0 + $0x874] ss:$36 sps:$4 sm:$0xff]  }
  0xcc   :  { %3291 = vmatprep.subr.bf16.mxu0 %v5946_v0  ;;  %v5662_v17 = vld [vmem:[%s7827_s0 + $0x5b4] ss:$36 sps:$4 sm:$0xff]  }
  0xcf   :  { %3292 = vmatpush1.bf16.msra.mxu0 %v5705_v26 }
  0xd0   :  { %3293 = vmatprep.subr.bf16.mxu0 %v5946_v0 }
  0xd1   :  { %2575 = vmatmul.mubr.bf16.gmra.mrb[72].mxu1 %v5580_v9  ;;  %v5656_v9 = vld [vmem:[%s7827_s0 + $0x56c] ss:$36 sps:$4 sm:$0xff]  }
  0xd2   :  { %3065 = vmatmul.mubr.bf16.gmra.mrb[28].mxu0 %v5581_v10  ;;  %2582 = vmatprep.mubr.bf16.mxu1 %v5582_v11 }
  0xd3   :  { %3072 = vmatprep.mubr.bf16.mxu0 %v5584_v12  ;;  %3294 = vmatpush1.bf16.msra.mxu0 %v5719_v36  ;;  %v5658_v12 = vld [vmem:[%s7827_s0 + $0x870] ss:$36 sps:$4 sm:$0xff]   ;;  %v5726_v36 = vld [vmem:[%s7826_s1 + $0x208] sm:$0xff]  }
  0xd4   :  { %3295 = vmatprep.subr.bf16.mxu0 %v5946_v0 }
  0xd7   :  { %3296 = vmatpush1.bf16.msra.mxu0 %v5733_v45  ;;  %v5759_v45 = vld [vmem:[%s7826_s1 + $0x218] sm:$0xff]  }
  0xd9   :  { %2583 = vmatmul.mubr.bf16.gmra.mrb[76].mxu1 %v5586_v13 }
  0xda   :  { %3073 = vmatmul.mubr.bf16.gmra.mrb[32].mxu0 %v5587_v14  ;;  %2590 = vmatprep.mubr.bf16.mxu1 %v5589_v15  ;;  %v5659_v14 = vld [vmem:[%s7827_s0 + $0x568] ss:$36 sps:$4 sm:$0xff]   ;;  %v5660_v15 = vld [vmem:[%s7827_s0 + $0x8bc] ss:$36 sps:$4 sm:$0xff]  }
  0xdb   :  { %3080 = vmatprep.mubr.bf16.mxu0 %v5591_v16 }
  0xe1   :  { %2591 = vmatmul.mubr.bf16.gmra.mrb[80].mxu1 %v5593_v18 }
  0xe2   :  { %3081 = vmatmul.mubr.bf16.gmra.mrb[36].mxu0 %v5594_v19  ;;  %2598 = vmatprep.mubr.bf16.mxu1 %v5595_v20  ;;  %v5664_v20 = vld [vmem:[%s7827_s0 + $0x8b8] ss:$36 sps:$4 sm:$0xff]  }
  0xe3   :  { %3088 = vmatprep.mubr.bf16.mxu0 %v5597_v21 }
  0xe9   :  { %2599 = vmatmul.mubr.bf16.gmra.mrb[84].mxu1 %v5599_v22  ;;  %v5665_v22 = vld [vmem:[%s7827_s0 + $0x5b0] ss:$36 sps:$4 sm:$0xff]  }
  0xea   :  { %3089 = vmatmul.mubr.bf16.gmra.mrb[40].mxu0 %v5600_v23  ;;  %2606 = vmatprep.mubr.bf16.mxu1 %v5602_v24  ;;  %v5669_v23 = vld [vmem:[%s7827_s0 + $0x324] ss:$36 sps:$4 sm:$0xff]  }
  0xeb   :  { %3096 = vmatprep.mubr.bf16.mxu0 %v5604_v25  ;;  %v5670_v25 = vld [vmem:[%s7827_s0 + $0x5fc] ss:$36 sps:$4 sm:$0xff]  }
  0xf1   :  { %2607 = vmatmul.mubr.bf16.gmra.mrb[88].mxu1 %v5606_v28 }
  0xf2   :  { %3097 = vmatmul.mubr.bf16.gmra.mrb[44].mxu0 %v5607_v29  ;;  %2614 = vmatprep.mubr.bf16.mxu1 %v5608_v30  ;;  %v5667_v29 = vld [vmem:[%s7827_s0 + $0x320] ss:$36 sps:$4 sm:$0xff]  }
  0xf3   :  { %3104 = vmatprep.mubr.bf16.mxu0 %v5610_v31  ;;  %v5672_v31 = vld [vmem:[%s7827_s0 + $0x5f8] ss:$36 sps:$4 sm:$0xff]  }
  0xf9   :  { %2615 = vmatmul.mubr.bf16.gmra.mrb[92].mxu1 %v5612_v32  ;;  %v5673_v32 = vld [vmem:[%s7827_s0 + $0x36c] ss:$36 sps:$4 sm:$0xff]  }
  0xfa   :  { %3105 = vmatmul.mubr.bf16.gmra.mrb[48].mxu0 %v5613_v33  ;;  %2622 = vmatprep.mubr.bf16.mxu1 %v5615_v34  ;;  %v5675_v34 = vld [vmem:[%s7827_s0 + $0x644] ss:$36 sps:$4 sm:$0xff]  }
  0xfb   :  { %3112 = vmatprep.mubr.bf16.mxu0 %v5617_v35 }
 0x101   :  { %2623 = vmatmul.mubr.bf16.gmra.mrb[96].mxu1 %v5619_v37 }
 0x102   :  { %3113 = vmatmul.mubr.bf16.gmra.mrb[52].mxu0 %v5620_v38  ;;  %2630 = vmatprep.mubr.bf16.mxu1 %v5621_v39  ;;  %v5745_v38 = vld [vmem:[%s7826_s1 + $0x210] sm:$0xff]   ;;  %v5677_v39 = vld [vmem:[%s7827_s0 + $0x368] ss:$36 sps:$4 sm:$0xff]  }
 0x103   :  { %3120 = vmatprep.mubr.bf16.mxu0 %v5623_v40 }
 0x109   :  { %2631 = vmatmul.mubr.bf16.gmra.mrb[100].mxu1 %v5625_v41  ;;  %v5678_v41 = vld [vmem:[%s7827_s0 + $0x640] ss:$36 sps:$4 sm:$0xff]  }
 0x10a   :  { %3121 = vmatmul.mubr.bf16.gmra.mrb[56].mxu0 %v5626_v42  ;;  %2638 = vmatprep.mubr.bf16.mxu1 %v5628_v43  ;;  %v5682_v43 = vld [vmem:[%s7827_s0 + $0x68c] ss:$36 sps:$4 sm:$0xff]  }
 0x10b   :  { %3128 = vmatprep.mubr.bf16.mxu0 %v5630_v44 }
 0x111   :  { %2639 = vmatmul.mubr.bf16.gmra.mrb[104].mxu1 %v5632_v46 }
 0x112   :  { %3129 = vmatmul.mubr.bf16.gmra.mrb[60].mxu0 %v5633_v47  ;;  %2646 = vmatprep.mubr.bf16.mxu1 %v5634_v48  ;;  %v5778_v47 = vld [vmem:[%s7826_s1 + $0x220] sm:$0xff]   ;;  %v5684_v48 = vld [vmem:[%s7827_s0 + $0x3b0] ss:$36 sps:$4 sm:$0xff]  }
 0x113   :  { %3136 = vmatprep.mubr.bf16.mxu0 %v5636_v49 }
 0x114   :  { %v6664_v50 = vpop.f32.mrb[0].mxu1 }
 0x115   :  { %v2434_v52 = vpop.f32.mrb[1].mxu1 }
 0x116   :  { %v6675_v55 = vpop.f32.mrb[2].mxu1  ;;  %v5686_v52 = vld [vmem:[%s7827_s0 + $0x3fc] ss:$36 sps:$4 sm:$0xff]  }
 0x117   :  { %v2437_v57 = vpop.f32.mrb[3].mxu1 }
 0x118   :  { %v5791_v57 = vld [vmem:[%s7826_s1 + $0x228] sm:$0xff]  }
 0x119   :  { %2647 = vmatmul.mubr.bf16.gmra.mrb[108].mxu1 %v5638_v51  ;;  %v5685_v51 = vld [vmem:[%s7827_s0 + $0x688] ss:$36 sps:$4 sm:$0xff]  }
 0x11a   :  { %3137 = vmatmul.mubr.bf16.gmra.mrb[64].mxu0 %v5639_v53  ;;  %2654 = vmatprep.mubr.bf16.mxu1 %v5641_v54  ;;  %v5688_v54 = vld [vmem:[%s7827_s0 + $0x6d4] ss:$36 sps:$4 sm:$0xff]  }
 0x11b   :  { %3144 = vmatprep.mubr.bf16.mxu0 %v5643_v56 }
 0x11c   :  { %v6680_v58 = vpop.f32.mrb[4].mxu1 }
 0x11d   :  { %v2442_v60 = vpop.f32.mrb[5].mxu1 }
 0x11e   :  { %v6691_v63 = vpop.f32.mrb[6].mxu1  ;;  %v5690_v60 = vld [vmem:[%s7827_s0 + $0x3f8] ss:$36 sps:$4 sm:$0xff]  }
 0x11f   :  { %v2445_v2 = vpop.f32.mrb[7].mxu1 }
 0x121   :  { %2655 = vmatmul.mubr.bf16.gmra.mrb[112].mxu1 %v5645_v59 }
 0x122   :  { %3145 = vmatmul.mubr.bf16.gmra.mrb[68].mxu0 %v5646_v61  ;;  %2662 = vmatprep.mubr.bf16.mxu1 %v5647_v62  ;;  %v5691_v62 = vld [vmem:[%s7827_s0 + $0x6d0] ss:$36 sps:$4 sm:$0xff]  }
 0x123   :  { %3152 = vmatprep.mubr.bf16.mxu0 %v5649_v1  ;;  %v5693_v1 = vld [vmem:[%s7827_s0 + $0x444] ss:$36 sps:$4 sm:$0xff]  }
 0x124   :  { %v6696_v3 = vpop.f32.mrb[8].mxu1 }
 0x125   :  { %v2450_v5 = vpop.f32.mrb[9].mxu1 }
 0x126   :  { %v6707_v8 = vpop.f32.mrb[10].mxu1 }
 0x127   :  { %v2453_v10 = vpop.f32.mrb[11].mxu1 }
 0x128   :  { %v5698_v10 = vld [vmem:[%s7827_s0 + $0x718] ss:$36 sps:$4 sm:$0xff]  }
 0x129   :  { %2663 = vmatmul.mubr.bf16.gmra.mrb[116].mxu1 %v5651_v4  ;;  %v5695_v4 = vld [vmem:[%s7827_s0 + $0x71c] ss:$36 sps:$4 sm:$0xff]  }
 0x12a   :  { %3153 = vmatmul.mubr.bf16.gmra.mrb[72].mxu0 %v5652_v6  ;;  %2670 = vmatprep.mubr.bf16.mxu1 %v5654_v7  ;;  %v5697_v7 = vld [vmem:[%s7827_s0 + $0x440] ss:$36 sps:$4 sm:$0xff]  }
 0x12b   :  { %3160 = vmatprep.mubr.bf16.mxu0 %v5656_v9 }
 0x12c   :  { %v6712_v11 = vpop.f32.mrb[12].mxu1 }
 0x12d   :  { %v2458_v13 = vpop.f32.mrb[13].mxu1 }
 0x12e   :  { %v6723_v16 = vpop.f32.mrb[14].mxu1 }
 0x12f   :  { %v2461_v18 = vpop.f32.mrb[15].mxu1 }
 0x130   :  { %v5805_v18 = vld [vmem:[%s7826_s1 + $0x238] sm:$0xff]  }
 0x131   :  { %2671 = vmatmul.mubr.bf16.gmra.mrb[120].mxu1 %v5658_v12  ;;  %v5699_v12 = vld [vmem:[%s7827_s0 + $0x48c] ss:$36 sps:$4 sm:$0xff]  }
 0x132   :  { %3161 = vmatmul.mubr.bf16.gmra.mrb[76].mxu0 %v5659_v14  ;;  %2678 = vmatprep.mubr.bf16.mxu1 %v5660_v15  ;;  %v5701_v14 = vld [vmem:[%s7827_s0 + $0x764] ss:$36 sps:$4 sm:$0xff]  }
 0x133   :  { %3168 = vmatprep.mubr.bf16.mxu0 %v5662_v17  ;;  %v5804_v17 = vld [vmem:[%s7826_s1 + $0x230] sm:$0xff]  }
 0x134   :  { %v6728_v19 = vpop.f32.mrb[16].mxu1 }
 0x135   :  { %v2466_v21 = vpop.f32.mrb[17].mxu1 }
 0x136   :  { %v6739_v24 = vpop.f32.mrb[18].mxu1  ;;  %v5703_v21 = vld [vmem:[%s7827_s0 + $0x488] ss:$36 sps:$4 sm:$0xff]  }
 0x137   :  { %v2469_v26 = vpop.f32.mrb[19].mxu1 }
 0x139   :  { %2679 = vmatmul.mubr.bf16.gmra.mrb[124].mxu1 %v5664_v20 }
 0x13a   :  { %3169 = vmatmul.mubr.bf16.gmra.mrb[80].mxu0 %v5665_v22  ;;  %2807 = vmatprep.mubr.bf16.mxu1 %v5669_v23  ;;  %v5704_v23 = vld [vmem:[%s7827_s0 + $0x760] ss:$36 sps:$4 sm:$0xff]  }
 0x13b   :  { %3176 = vmatprep.mubr.bf16.mxu0 %v5670_v25  ;;  %v5707_v25 = vld [vmem:[%s7827_s0 + $0x4d4] ss:$36 sps:$4 sm:$0xff]  }
 0x13c   :  { %v6744_v28 = vpop.f32.mrb[20].mxu1 }
 0x13d   :  { %v2474_v30 = vpop.f32.mrb[21].mxu1 }
 0x13e   :  { %v6755_v33 = vpop.f32.mrb[22].mxu1 }
 0x13f   :  { %v2477_v35 = vpop.f32.mrb[23].mxu1 }
 0x140   :  { %v5715_v35 = vld [vmem:[%s7827_s0 + $0x7f4] ss:$36 sps:$4 sm:$0xff]  }
 0x141   :  { %2808 = vmatmul.mubr.bf16.vlgmr.msra.gmra.mrb[44].mxu1 %v5667_v29  ;;  %v5709_v29 = vld [vmem:[%s7827_s0 + $0x7ac] ss:$36 sps:$4 sm:$0xff]  }
 0x142   :  { %3177 = vmatmul.mubr.bf16.gmra.mrb[84].mxu0 %v5672_v31  ;;  %2815 = vmatprep.mubr.bf16.mxu1 %v5673_v32  ;;  %v5711_v31 = vld [vmem:[%s7827_s0 + $0x4d0] ss:$36 sps:$4 sm:$0xff]   ;;  %v5712_v32 = vld [vmem:[%s7827_s0 + $0x7a8] ss:$36 sps:$4 sm:$0xff]  }
 0x143   :  { %3184 = vmatprep.mubr.bf16.mxu0 %v5675_v34  ;;  %4984 = vmatpush3.bf16.msra.mxu1 %v6593_v27  ;;  %v5680_v27 = vld [vmem:[%s7827_s0 + $0x3b4] ss:$36 sps:$4 sm:$0xff]   ;;  %v5713_v34 = vld [vmem:[%s7827_s0 + $0x51c] ss:$36 sps:$4 sm:$0xff]  }
 0x144   :  { %v6764_v37 = vpop.f32.mrb[24].mxu1  ;;  %4985 = vmatprep.subr.bf16.mxu1 %v5726_v36 }
 0x145   :  { %v2482_v40 = vpop.f32.mrb[25].mxu1 }
 0x146   :  { %v6778_v42 = vpop.f32.mrb[26].mxu1  ;;  %v5722_v40 = vld [vmem:[%s7827_s0 + $0x83c] ss:$36 sps:$4 sm:$0xff]  }
 0x147   :  { %v2485_v44 = vpop.f32.mrb[27].mxu1  ;;  %4986 = vmatpush3.bf16.msra.mxu1 %v5726_v36  ;;  %v5717_v36 = vld [vmem:[%s7827_s0 + $0x518] ss:$36 sps:$4 sm:$0xff]  }
 0x148   :  { %4987 = vmatprep.subr.bf16.mxu1 %v5745_v38  ;;  %v5729_v44 = vld [vmem:[%s7827_s0 + $0x884] ss:$36 sps:$4 sm:$0xff]  }
 0x149   :  { %2816 = vmatmul.mubr.bf16.gmra.mrb[48].mxu1 %v5677_v39  ;;  %v5720_v39 = vld [vmem:[%s7827_s0 + $0x564] ss:$36 sps:$4 sm:$0xff]  }
 0x14a   :  { %3185 = vmatmul.mubr.bf16.gmra.mrb[88].mxu0 %v5678_v41  ;;  %2823 = vmatprep.mubr.bf16.mxu1 %v5680_v27  ;;  %v5724_v41 = vld [vmem:[%s7827_s0 + $0x560] ss:$36 sps:$4 sm:$0xff]   ;;  %v5725_v27 = vld [vmem:[%s7827_s0 + $0x838] ss:$36 sps:$4 sm:$0xff]  }
 0x14b   :  { %3192 = vmatprep.mubr.bf16.mxu0 %v5682_v43  ;;  %4988 = vmatpush3.bf16.msra.mxu1 %v5745_v38  ;;  %v5718_v38 = vld [vmem:[%s7827_s0 + $0x7f0] ss:$36 sps:$4 sm:$0xff]  }
 0x14c   :  { %v6786_v46 = vpop.f32.mrb[28].mxu1  ;;  %4989 = vmatprep.subr.bf16.mxu1 %v5759_v45  ;;  %v5727_v43 = vld [vmem:[%s7827_s0 + $0x5ac] ss:$36 sps:$4 sm:$0xff]  }
 0x14d   :  { %v2490_v49 = vpop.f32.mrb[29].mxu1 }
 0x14e   :  { %v6800_v53 = vpop.f32.mrb[30].mxu1  ;;  %v5736_v49 = vld [vmem:[%s7827_s0 + $0x8cc] ss:$36 sps:$4 sm:$0xff]  }
 0x14f   :  { %v2493_v56 = vpop.f32.mrb[31].mxu1  ;;  %4990 = vmatpush3.bf16.msra.mxu1 %v5759_v45  ;;  %v5731_v45 = vld [vmem:[%s7827_s0 + $0x5a8] ss:$36 sps:$4 sm:$0xff]  }
 0x150   :  { %4991 = vmatprep.subr.bf16.mxu1 %v5778_v47  ;;  %v5744_v56 = vld [vmem:[%s7827_s0 + $0x1c] ss:$36 sps:$4 sm:$0xff]  }
 0x151   :  { %2824 = vmatmul.mubr.bf16.gmra.mrb[52].mxu1 %v5684_v48  ;;  %v5734_v48 = vld [vmem:[%s7827_s0 + $0x5f4] ss:$36 sps:$4 sm:$0xff]  }
 0x152   :  { %3193 = vmatmul.mubr.bf16.gmra.mrb[92].mxu0 %v5685_v51  ;;  %2831 = vmatprep.mubr.bf16.mxu1 %v5686_v52  ;;  %v5738_v51 = vld [vmem:[%s7827_s0 + $0x5f0] ss:$36 sps:$4 sm:$0xff]   ;;  %v5739_v52 = vld [vmem:[%s7827_s0 + $0x8c8] ss:$36 sps:$4 sm:$0xff]  }
 0x153   :  { %3200 = vmatprep.mubr.bf16.mxu0 %v5688_v54  ;;  %4992 = vmatpush3.bf16.msra.mxu1 %v5778_v47  ;;  %v5732_v47 = vld [vmem:[%s7827_s0 + $0x880] ss:$36 sps:$4 sm:$0xff]  }
 0x154   :  { %v6808_v59 = vpop.f32.mrb[32].mxu1  ;;  %4993 = vmatprep.subr.bf16.mxu1 %v5791_v57  ;;  %v5740_v54 = vld [vmem:[%s7827_s0 + $0x63c] ss:$36 sps:$4 sm:$0xff]  }
 0x155   :  { %v2498_v61 = vpop.f32.mrb[33].mxu1 }
 0x156   :  { %v6819_v2 = vpop.f32.mrb[34].mxu1  ;;  %v5747_v61 = vld [vmem:[%s7827_s0 + $0x684] ss:$36 sps:$4 sm:$0xff]  }
 0x157   :  { %v2501_v5 = vpop.f32.mrb[35].mxu1  ;;  %4994 = vmatpush3.bf16.msra.mxu1 %v5791_v57  ;;  %v5746_v57 = vld [vmem:[%s7827_s0 + $0x638] ss:$36 sps:$4 sm:$0xff]  }
 0x158   :  { %4995 = vmatprep.subr.bf16.mxu1 %v5804_v17  ;;  %v5753_v5 = vld [vmem:[%s7827_s0 + $0x6cc] ss:$36 sps:$4 sm:$0xff]  }
 0x159   :  { %2832 = vmatmul.mubr.bf16.gmra.mrb[56].mxu1 %v5690_v60  ;;  %v5742_v60 = vld [vmem:[%s7827_s0 + $0x18] ss:$36 sps:$4 sm:$0xff]  }
 0x15a   :  { %3201 = vmatmul.mubr.bf16.gmra.mrb[96].mxu0 %v5691_v62  ;;  %2839 = vmatprep.mubr.bf16.mxu1 %v5693_v1  ;;  %v5749_v62 = vld [vmem:[%s7827_s0 + $0x64] ss:$36 sps:$4 sm:$0xff]  }
 0x15b   :  { %3208 = vmatprep.mubr.bf16.mxu0 %v5695_v4  ;;  %4996 = vmatpush3.bf16.msra.mxu1 %v5804_v17  ;;  %v5751_v1 = vld [vmem:[%s7827_s0 + $0x680] ss:$36 sps:$4 sm:$0xff]   ;;  %v5765_v17 = vld [vmem:[%s7827_s0 + $0xf0] ss:$36 sps:$4 sm:$0xff]  }
 0x15c   :  { %v6824_v6 = vpop.f32.mrb[36].mxu1  ;;  %4997 = vmatprep.subr.bf16.mxu1 %v5805_v18  ;;  %v5752_v4 = vld [vmem:[%s7827_s0 + $0x60] ss:$36 sps:$4 sm:$0xff]  }
 0x15d   :  { %v2506_v9 = vpop.f32.mrb[37].mxu1 }
 0x15e   :  { %v6835_v13 = vpop.f32.mrb[38].mxu1  ;;  %v5757_v9 = vld [vmem:[%s7827_s0 + $0x6c8] ss:$36 sps:$4 sm:$0xff]  }
 0x15f   :  { %v2509_v15 = vpop.f32.mrb[39].mxu1  ;;  %4998 = vmatpush3.bf16.msra.mxu1 %v5805_v18  ;;  %v5766_v18 = vld [vmem:[%s7827_s0 + $0x75c] ss:$36 sps:$4 sm:$0xff]  }
 0x160   :  { %v5764_v15 = vld [vmem:[%s7827_s0 + $0x710] ss:$36 sps:$4 sm:$0xff]  }
 0x161   :  { %2840 = vmatmul.mubr.bf16.gmra.mrb[60].mxu1 %v5697_v7  ;;  %v5755_v7 = vld [vmem:[%s7827_s0 + $0xac] ss:$36 sps:$4 sm:$0xff]  }
 0x162   :  { %3209 = vmatmul.mubr.bf16.gmra.mrb[100].mxu0 %v5698_v10  ;;  %2847 = vmatprep.mubr.bf16.mxu1 %v5699_v12  ;;  %v5758_v10 = vld [vmem:[%s7827_s0 + $0xa8] ss:$36 sps:$4 sm:$0xff]   ;;  %v5760_v12 = vld [vmem:[%s7827_s0 + $0x714] ss:$36 sps:$4 sm:$0xff]  }
 0x163   :  { %3216 = vmatprep.mubr.bf16.mxu0 %v5701_v14  ;;  %v5762_v14 = vld [vmem:[%s7827_s0 + $0xf4] ss:$36 sps:$4 sm:$0xff]  }
 0x164   :  { %v6846_v20 = vpop.f32.mrb[40].mxu1 }
 0x165   :  { %v2514_v22 = vpop.f32.mrb[41].mxu1 }
 0x166   :  { %v6857_v26 = vpop.f32.mrb[42].mxu1  ;;  %v5770_v22 = vld [vmem:[%s7827_s0 + $0x758] ss:$36 sps:$4 sm:$0xff]  }
 0x167   :  { %v2517_v30 = vpop.f32.mrb[43].mxu1 }
 0x168   :  { %v5776_v30 = vld [vmem:[%s7827_s0 + $0x7a0] ss:$36 sps:$4 sm:$0xff]  }
 0x169   :  { %2848 = vmatmul.mubr.bf16.gmra.mrb[64].mxu1 %v5703_v21  ;;  %v5768_v21 = vld [vmem:[%s7827_s0 + $0x13c] ss:$36 sps:$4 sm:$0xff]  }
 0x16a   :  { %3217 = vmatmul.mubr.bf16.gmra.mrb[104].mxu0 %v5704_v23  ;;  %2855 = vmatprep.mubr.bf16.mxu1 %v5707_v25  ;;  %v5771_v23 = vld [vmem:[%s7827_s0 + $0x138] ss:$36 sps:$4 sm:$0xff]   ;;  %v5772_v25 = vld [vmem:[%s7827_s0 + $0x7a4] ss:$36 sps:$4 sm:$0xff]  }
 0x16b   :  { %3224 = vmatprep.mubr.bf16.mxu0 %v5709_v29  ;;  %v5774_v29 = vld [vmem:[%s7827_s0 + $0x184] ss:$36 sps:$4 sm:$0xff]  }
 0x171   :  { %2856 = vmatmul.mubr.bf16.gmra.mrb[68].mxu1 %v5711_v31  ;;  %v5777_v31 = vld [vmem:[%s7827_s0 + $0x180] ss:$36 sps:$4 sm:$0xff]  }
 0x172   :  { %3225 = vmatmul.mubr.bf16.gmra.mrb[108].mxu0 %v5712_v32  ;;  %2863 = vmatprep.mubr.bf16.mxu1 %v5713_v34  ;;  %v5779_v32 = vld [vmem:[%s7827_s0 + $0x7ec] ss:$36 sps:$4 sm:$0xff]  }
 0x173   :  { %3232 = vmatprep.mubr.bf16.mxu0 %v5715_v35  ;;  %v5781_v34 = vld [vmem:[%s7827_s0 + $0x1cc] ss:$36 sps:$4 sm:$0xff]  }
 0x174   :  { %v5783_v35 = vld [vmem:[%s7827_s0 + $0x7e8] ss:$36 sps:$4 sm:$0xff]  }
 0x179   :  { %2864 = vmatmul.mubr.bf16.gmra.mrb[72].mxu1 %v5717_v36  ;;  %v5784_v36 = vld [vmem:[%s7827_s0 + $0x1c8] ss:$36 sps:$4 sm:$0xff]  }
 0x17a   :  { %3233 = vmatmul.mubr.bf16.gmra.mrb[112].mxu0 %v5718_v38  ;;  %2871 = vmatprep.mubr.bf16.mxu1 %v5720_v39  ;;  %v5785_v38 = vld [vmem:[%s7827_s0 + $0x834] ss:$36 sps:$4 sm:$0xff]  }
 0x17b   :  { %3240 = vmatprep.mubr.bf16.mxu0 %v5722_v40  ;;  %v5787_v39 = vld [vmem:[%s7827_s0 + $0x214] ss:$36 sps:$4 sm:$0xff]  }
 0x17c   :  { %v5789_v40 = vld [vmem:[%s7827_s0 + $0x830] ss:$36 sps:$4 sm:$0xff]  }
 0x181   :  { %2872 = vmatmul.mubr.bf16.gmra.mrb[76].mxu1 %v5724_v41  ;;  %v5790_v41 = vld [vmem:[%s7827_s0 + $0x210] ss:$36 sps:$4 sm:$0xff]  }
 0x182   :  { %3241 = vmatmul.mubr.bf16.gmra.mrb[116].mxu0 %v5725_v27  ;;  %2879 = vmatprep.mubr.bf16.mxu1 %v5727_v43  ;;  %v5792_v27 = vld [vmem:[%s7827_s0 + $0x87c] ss:$36 sps:$4 sm:$0xff]  }
 0x183   :  { %3248 = vmatprep.mubr.bf16.mxu0 %v5729_v44  ;;  %v5794_v43 = vld [vmem:[%s7827_s0 + $0x25c] ss:$36 sps:$4 sm:$0xff]  }
 0x184   :  { %v5796_v44 = vld [vmem:[%s7827_s0 + $0x878] ss:$36 sps:$4 sm:$0xff]  }
 0x189   :  { %2880 = vmatmul.mubr.bf16.gmra.mrb[80].mxu1 %v5731_v45  ;;  %v5797_v45 = vld [vmem:[%s7827_s0 + $0x258] ss:$36 sps:$4 sm:$0xff]  }
 0x18a   :  { %3249 = vmatmul.mubr.bf16.gmra.mrb[120].mxu0 %v5732_v47  ;;  %2887 = vmatprep.mubr.bf16.mxu1 %v5734_v48  ;;  %v5798_v47 = vld [vmem:[%s7827_s0 + $0x8c4] ss:$36 sps:$4 sm:$0xff]  }
 0x18b   :  { %3256 = vmatprep.mubr.bf16.mxu0 %v5736_v49  ;;  %v5800_v48 = vld [vmem:[%s7827_s0 + $0x2a4] ss:$36 sps:$4 sm:$0xff]  }
 0x18c   :  { %v5802_v49 = vld [vmem:[%s7827_s0 + $0x8c0] ss:$36 sps:$4 sm:$0xff]  }
 0x191   :  { %2888 = vmatmul.mubr.bf16.gmra.mrb[84].mxu1 %v5738_v51  ;;  %v5803_v51 = vld [vmem:[%s7827_s0 + $0x2a0] ss:$36 sps:$4 sm:$0xff]  }
 0x192   :  { %3257 = vmatmul.mubr.bf16.gmra.mrb[124].mxu0 %v5739_v52  ;;  %2895 = vmatprep.mubr.bf16.mxu1 %v5740_v54  ;;  %v5808_v52 = vld [vmem:[%s7827_s0 + $0x20] ss:$36 sps:$4 sm:$0xff]   ;;  %v5806_v54 = vld [vmem:[%s7827_s0 + $0x2ec] ss:$36 sps:$4 sm:$0xff]  }
 0x193   :  { %3297 = vmatprep.mubr.bf16.mxu0 %v5744_v56  ;;  %v5810_v56 = vld [vmem:[%s7827_s0 + $0x68] ss:$36 sps:$4 sm:$0xff]  }
 0x199   :  { %2896 = vmatmul.mubr.bf16.gmra.mrb[88].mxu1 %v5746_v57  ;;  %v5809_v57 = vld [vmem:[%s7827_s0 + $0x2e8] ss:$36 sps:$4 sm:$0xff]  }
 0x19a   :  { %3298 = vmatmul.mubr.bf16.vlgmr.msra.gmra.mrb[0].mxu0 %v5742_v60  ;;  %2903 = vmatprep.mubr.bf16.mxu1 %v5747_v61  ;;  %v5813_v60 = vld [vmem:[%s7827_s0 + $0xb0] ss:$36 sps:$4 sm:$0xff]  }
 0x19b   :  { %3305 = vmatprep.mubr.bf16.mxu0 %v5749_v62  ;;  %v5811_v61 = vld [vmem:[%s7827_s0 + $0x334] ss:$36 sps:$4 sm:$0xff]  }
 0x19c   :  { %v5815_v62 = vld [vmem:[%s7827_s0 + $0xf8] ss:$36 sps:$4 sm:$0xff]  }
 0x1a1   :  { %2904 = vmatmul.mubr.bf16.gmra.mrb[92].mxu1 %v5751_v1  ;;  %v5814_v1 = vld [vmem:[%s7827_s0 + $0x330] ss:$36 sps:$4 sm:$0xff]  }
 0x1a2   :  { %3306 = vmatmul.mubr.bf16.gmra.mrb[4].mxu0 %v5752_v4  ;;  %2911 = vmatprep.mubr.bf16.mxu1 %v5753_v5  ;;  %v5818_v4 = vld [vmem:[%s7827_s0 + $0x140] ss:$36 sps:$4 sm:$0xff]  }
 0x1a3   :  { %3313 = vmatprep.mubr.bf16.mxu0 %v5755_v7  ;;  %v5816_v5 = vld [vmem:[%s7827_s0 + $0x37c] ss:$36 sps:$4 sm:$0xff]   ;;  %v5820_v7 = vld [vmem:[%s7827_s0 + $0x188] ss:$36 sps:$4 sm:$0xff]  }
 0x1a9   :  { %2912 = vmatmul.mubr.bf16.gmra.mrb[96].mxu1 %v5757_v9  ;;  %v5819_v9 = vld [vmem:[%s7827_s0 + $0x378] ss:$36 sps:$4 sm:$0xff]  }
 0x1aa   :  { %3314 = vmatmul.mubr.bf16.gmra.mrb[8].mxu0 %v5758_v10  ;;  %2919 = vmatprep.mubr.bf16.mxu1 %v5760_v12  ;;  %v5823_v10 = vld [vmem:[%s7827_s0 + $0x1d0] ss:$36 sps:$4 sm:$0xff]   ;;  %v5821_v12 = vld [vmem:[%s7827_s0 + $0x3c4] ss:$36 sps:$4 sm:$0xff]  }
 0x1ab   :  { %3321 = vmatprep.mubr.bf16.mxu0 %v5762_v14  ;;  %v5825_v14 = vld [vmem:[%s7827_s0 + $0x218] ss:$36 sps:$4 sm:$0xff]  }
 0x1b1   :  { %2920 = vmatmul.mubr.bf16.gmra.mrb[100].mxu1 %v5764_v15  ;;  %v5824_v15 = vld [vmem:[%s7827_s0 + $0x3c0] ss:$36 sps:$4 sm:$0xff]  }
 0x1b2   :  { %3322 = vmatmul.mubr.bf16.gmra.mrb[12].mxu0 %v5765_v17  ;;  %2927 = vmatprep.mubr.bf16.mxu1 %v5766_v18  ;;  %v5828_v17 = vld [vmem:[%s7827_s0 + $0x260] ss:$36 sps:$4 sm:$0xff]   ;;  %v5826_v18 = vld [vmem:[%s7827_s0 + $0x40c] ss:$36 sps:$4 sm:$0xff]  }
 0x1b3   :  { %3329 = vmatprep.mubr.bf16.mxu0 %v5768_v21  ;;  %v5830_v21 = vld [vmem:[%s7827_s0 + $0x2a8] ss:$36 sps:$4 sm:$0xff]  }
 0x1b9   :  { %2928 = vmatmul.mubr.bf16.gmra.mrb[104].mxu1 %v5770_v22  ;;  %v5829_v22 = vld [vmem:[%s7827_s0 + $0x408] ss:$36 sps:$4 sm:$0xff]  }
 0x1ba   :  { %3330 = vmatmul.mubr.bf16.gmra.mrb[16].mxu0 %v5771_v23  ;;  %2935 = vmatprep.mubr.bf16.mxu1 %v5772_v25  ;;  %v5833_v23 = vld [vmem:[%s7827_s0 + $0x2f0] ss:$36 sps:$4 sm:$0xff]  }
 0x1bb   :  { %3337 = vmatprep.mubr.bf16.mxu0 %v5774_v29  ;;  %v5831_v25 = vld [vmem:[%s7827_s0 + $0x454] ss:$36 sps:$4 sm:$0xff]  }
 0x1bc   :  { %v5835_v29 = vld [vmem:[%s7827_s0 + $0x338] ss:$36 sps:$4 sm:$0xff]  }
 0x1c1   :  { %2936 = vmatmul.mubr.bf16.gmra.mrb[108].mxu1 %v5776_v30  ;;  %v5834_v30 = vld [vmem:[%s7827_s0 + $0x450] ss:$36 sps:$4 sm:$0xff]  }
 0x1c2   :  { %3338 = vmatmul.mubr.bf16.gmra.mrb[20].mxu0 %v5777_v31  ;;  %2943 = vmatprep.mubr.bf16.mxu1 %v5779_v32  ;;  %v5838_v31 = vld [vmem:[%s7827_s0 + $0x380] ss:$36 sps:$4 sm:$0xff]  }
 0x1c3   :  { %3345 = vmatprep.mubr.bf16.mxu0 %v5781_v34  ;;  %v5836_v32 = vld [vmem:[%s7827_s0 + $0x49c] ss:$36 sps:$4 sm:$0xff]  }
 0x1c9   :  { %2944 = vmatmul.mubr.bf16.gmra.mrb[112].mxu1 %v5783_v35 }
 0x1ca   :  { %3346 = vmatmul.mubr.bf16.gmra.mrb[24].mxu0 %v5784_v36  ;;  %2951 = vmatprep.mubr.bf16.mxu1 %v5785_v38  ;;  %v5840_v36 = vld [vmem:[%s7827_s0 + $0x3c8] ss:$36 sps:$4 sm:$0xff]  }
 0x1cb   :  { %3353 = vmatprep.mubr.bf16.mxu0 %v5787_v39  ;;  %v5839_v39 = vld [vmem:[%s7827_s0 + $0x498] ss:$36 sps:$4 sm:$0xff]  }
 0x1d1   :  { %2952 = vmatmul.mubr.bf16.gmra.mrb[116].mxu1 %v5789_v40  ;;  %v5843_v40 = vld [vmem:[%s7827_s0 + $0x410] ss:$36 sps:$4 sm:$0xff]  }
 0x1d2   :  { %3354 = vmatmul.mubr.bf16.gmra.mrb[28].mxu0 %v5790_v41  ;;  %2959 = vmatprep.mubr.bf16.mxu1 %v5792_v27  ;;  %v5841_v27 = vld [vmem:[%s7827_s0 + $0x4e4] ss:$36 sps:$4 sm:$0xff]  }
 0x1d3   :  { %3361 = vmatprep.mubr.bf16.mxu0 %v5794_v43 }
 0x1d9   :  { %2960 = vmatmul.mubr.bf16.gmra.mrb[120].mxu1 %v5796_v44 }
 0x1da   :  { %3362 = vmatmul.mubr.bf16.gmra.mrb[32].mxu0 %v5797_v45  ;;  %2967 = vmatprep.mubr.bf16.mxu1 %v5798_v47  ;;  %v5845_v45 = vld [vmem:[%s7827_s0 + $0x458] ss:$36 sps:$4 sm:$0xff]  }
 0x1db   :  { %3369 = vmatprep.mubr.bf16.mxu0 %v5800_v48  ;;  %v5844_v48 = vld [vmem:[%s7827_s0 + $0x4e0] ss:$36 sps:$4 sm:$0xff]  }
 0x1e1   :  { %2968 = vmatmul.mubr.bf16.gmra.mrb[124].mxu1 %v5802_v49  ;;  %v5848_v49 = vld [vmem:[%s7827_s0 + $0x4a0] ss:$36 sps:$4 sm:$0xff]  }
 0x1e2   :  { %3370 = vmatmul.mubr.bf16.gmra.mrb[36].mxu0 %v5803_v51  ;;  %4999 = vmatprep.mubr.bf16.mxu1 %v5808_v52  ;;  %v5846_v52 = vld [vmem:[%s7827_s0 + $0x52c] ss:$36 sps:$4 sm:$0xff]  }
 0x1e3   :  { %3377 = vmatprep.mubr.bf16.mxu0 %v5806_v54 }
 0x1e9   :  { %5000 = vmatmul.mubr.bf16.vlgmr.msra.gmra.mrb[128].mxu1 %v5810_v56 }
 0x1ea   :  { %3378 = vmatmul.mubr.bf16.gmra.mrb[40].mxu0 %v5809_v57  ;;  %5003 = vmatprep.mubr.bf16.mxu1 %v5813_v60  ;;  %v5850_v57 = vld [vmem:[%s7827_s0 + $0x4e8] ss:$36 sps:$4 sm:$0xff]  }
 0x1eb   :  { %3385 = vmatprep.mubr.bf16.mxu0 %v5811_v61  ;;  %v5849_v61 = vld [vmem:[%s7827_s0 + $0x528] ss:$36 sps:$4 sm:$0xff]  }
 0x1f1   :  { %5004 = vmatmul.mubr.bf16.gmra.mrb[132].mxu1 %v5815_v62  ;;  %v5853_v62 = vld [vmem:[%s7827_s0 + $0x530] ss:$36 sps:$4 sm:$0xff]  }
 0x1f2   :  { %3386 = vmatmul.mubr.bf16.gmra.mrb[44].mxu0 %v5814_v1  ;;  %5007 = vmatprep.mubr.bf16.mxu1 %v5818_v4  ;;  %v5851_v4 = vld [vmem:[%s7827_s0 + $0x574] ss:$36 sps:$4 sm:$0xff]  }
 0x1f3   :  { %3393 = vmatprep.mubr.bf16.mxu0 %v5816_v5 }
 0x1f9   :  { %5008 = vmatmul.mubr.bf16.gmra.mrb[136].mxu1 %v5820_v7 }
 0x1fa   :  { %3394 = vmatmul.mubr.bf16.gmra.mrb[48].mxu0 %v5819_v9  ;;  %5011 = vmatprep.mubr.bf16.mxu1 %v5823_v10  ;;  %v5855_v9 = vld [vmem:[%s7827_s0 + $0x578] ss:$36 sps:$4 sm:$0xff]  }
 0x1fb   :  { %3401 = vmatprep.mubr.bf16.mxu0 %v5821_v12  ;;  %v5854_v12 = vld [vmem:[%s7827_s0 + $0x570] ss:$36 sps:$4 sm:$0xff]  }
 0x201   :  { %5012 = vmatmul.mubr.bf16.gmra.mrb[140].mxu1 %v5825_v14  ;;  %v5859_v14 = vld [vmem:[%s7827_s0 + $0x5c0] ss:$36 sps:$4 sm:$0xff]  }
 0x202   :  { %3402 = vmatmul.mubr.bf16.gmra.mrb[52].mxu0 %v5824_v15  ;;  %5015 = vmatprep.mubr.bf16.mxu1 %v5828_v17  ;;  %v5856_v17 = vld [vmem:[%s7827_s0 + $0x5bc] ss:$36 sps:$4 sm:$0xff]  }
 0x203   :  { %3409 = vmatprep.mubr.bf16.mxu0 %v5826_v18 }
 0x209   :  { %5016 = vmatmul.mubr.bf16.gmra.mrb[144].mxu1 %v5830_v21 }
 0x20a   :  { %3410 = vmatmul.mubr.bf16.gmra.mrb[56].mxu0 %v5829_v22  ;;  %5019 = vmatprep.mubr.bf16.mxu1 %v5833_v23  ;;  %v5860_v22 = vld [vmem:[%s7827_s0 + $0x608] ss:$36 sps:$4 sm:$0xff]  }
 0x20b   :  { %3417 = vmatprep.mubr.bf16.mxu0 %v5831_v25  ;;  %v5858_v25 = vld [vmem:[%s7827_s0 + $0x5b8] ss:$36 sps:$4 sm:$0xff]  }
 0x211   :  { %5020 = vmatmul.mubr.bf16.gmra.mrb[148].mxu1 %v5835_v29  ;;  %v5867_v29 = vld [vmem:[%s7827_s0 + $0x650] ss:$36 sps:$4 sm:$0xff]  }
 0x212   :  { %3418 = vmatmul.mubr.bf16.gmra.mrb[60].mxu0 %v5834_v30  ;;  %5023 = vmatprep.mubr.bf16.mxu1 %v5838_v31  ;;  %v5861_v31 = vld [vmem:[%s7827_s0 + $0x604] ss:$36 sps:$4 sm:$0xff]  }
 0x213   :  { %3425 = vmatprep.mubr.bf16.mxu0 %v5836_v32 }
 0x214   :  { %v7114_v34 = vpop.f32.mrb[44].mxu1 }
 0x215   :  { %v2811_v35 = vpop.f32.mrb[45].mxu1 }
 0x216   :  { %v7119_v38 = vpop.f32.mrb[46].mxu1 }
 0x217   :  { %v2814_v41 = vpop.f32.mrb[47].mxu1 }
 0x218   :  { %v5875_v41 = vld [vmem:[%s7827_s0 + $0x6e0] ss:$36 sps:$4 sm:$0xff]  }
 0x219   :  { %5024 = vmatmul.mubr.bf16.gmra.mrb[152].mxu1 %v5840_v36  ;;  %v5868_v36 = vld [vmem:[%s7827_s0 + $0x698] ss:$36 sps:$4 sm:$0xff]  }
 0x21a   :  { %3426 = vmatmul.mubr.bf16.gmra.mrb[64].mxu0 %v5839_v39  ;;  %5027 = vmatprep.mubr.bf16.mxu1 %v5843_v40  ;;  %v5863_v40 = vld [vmem:[%s7827_s0 + $0x600] ss:$36 sps:$4 sm:$0xff]  }
 0x21b   :  { %3433 = vmatprep.mubr.bf16.mxu0 %v5841_v27 }
 0x21c   :  { %v7130_v43 = vpop.f32.mrb[48].mxu1 }
 0x21d   :  { %v2819_v44 = vpop.f32.mrb[49].mxu1 }
 0x21e   :  { %v7135_v47 = vpop.f32.mrb[50].mxu1  ;;  %v5864_v44 = vld [vmem:[%s7827_s0 + $0x64c] ss:$36 sps:$4 sm:$0xff]  }
 0x21f   :  { %v2822_v51 = vpop.f32.mrb[51].mxu1 }
 0x221   :  { %5028 = vmatmul.mubr.bf16.gmra.mrb[156].mxu1 %v5845_v45 }
 0x222   :  { %3434 = vmatmul.mubr.bf16.gmra.mrb[68].mxu0 %v5844_v48  ;;  %5031 = vmatprep.mubr.bf16.mxu1 %v5848_v49  ;;  %v5876_v49 = vld [vmem:[%s7827_s0 + $0x728] ss:$36 sps:$4 sm:$0xff]  }
 0x223   :  { %3441 = vmatprep.mubr.bf16.mxu0 %v5846_v52  ;;  %v5866_v52 = vld [vmem:[%s7827_s0 + $0x648] ss:$36 sps:$4 sm:$0xff]  }
 0x224   :  { %v7146_v54 = vpop.f32.mrb[52].mxu1 }
 0x225   :  { %v2827_v56 = vpop.f32.mrb[53].mxu1 }
 0x226   :  { %v7151_v60 = vpop.f32.mrb[54].mxu1  ;;  %v5883_v56 = vld [vmem:[%s7827_s0 + $0x770] ss:$36 sps:$4 sm:$0xff]  }
 0x227   :  { %v2830_v1 = vpop.f32.mrb[55].mxu1 }
 0x229   :  { %5032 = vmatmul.mubr.bf16.gmra.mrb[160].mxu1 %v5850_v57 }
 0x22a   :  { %3442 = vmatmul.mubr.bf16.gmra.mrb[72].mxu0 %v5849_v61  ;;  %5035 = vmatprep.mubr.bf16.mxu1 %v5853_v62  ;;  %v5869_v61 = vld [vmem:[%s7827_s0 + $0x694] ss:$36 sps:$4 sm:$0xff]  }
 0x22b   :  { %3449 = vmatprep.mubr.bf16.mxu0 %v5851_v4  ;;  %v5884_v4 = vld [vmem:[%s7827_s0 + $0x7b8] ss:$36 sps:$4 sm:$0xff]  }
 0x22c   :  { %v7162_v5 = vpop.f32.mrb[56].mxu1 }
 0x22d   :  { %v2835_v7 = vpop.f32.mrb[57].mxu1 }
 0x22e   :  { %v7167_v10 = vpop.f32.mrb[58].mxu1 }
 0x22f   :  { %v2838_v15 = vpop.f32.mrb[59].mxu1 }
 0x230   :  { %v5872_v15 = vld [vmem:[%s7827_s0 + $0x6dc] ss:$36 sps:$4 sm:$0xff]  }
 0x231   :  { %5036 = vmatmul.mubr.bf16.gmra.mrb[164].mxu1 %v5855_v9  ;;  %v5871_v9 = vld [vmem:[%s7827_s0 + $0x690] ss:$36 sps:$4 sm:$0xff]  }
 0x232   :  { %3450 = vmatmul.mubr.bf16.gmra.mrb[76].mxu0 %v5854_v12  ;;  %5039 = vmatprep.mubr.bf16.mxu1 %v5859_v14  ;;  %v5891_v12 = vld [vmem:[%s7827_s0 + $0x800] ss:$36 sps:$4 sm:$0xff]  }
 0x233   :  { %3457 = vmatprep.mubr.bf16.mxu0 %v5856_v17 }
 0x234   :  { %v7178_v18 = vpop.f32.mrb[60].mxu1 }
 0x235   :  { %v2843_v21 = vpop.f32.mrb[61].mxu1 }
 0x236   :  { %v7183_v23 = vpop.f32.mrb[62].mxu1 }
 0x237   :  { %v2846_v30 = vpop.f32.mrb[63].mxu1 }
 0x238   :  { %v5899_v30 = vld [vmem:[%s7827_s0 + $0x890] ss:$36 sps:$4 sm:$0xff]  }
 0x239   :  { %5040 = vmatmul.mubr.bf16.gmra.mrb[168].mxu1 %v5860_v22  ;;  %v5892_v22 = vld [vmem:[%s7827_s0 + $0x848] ss:$36 sps:$4 sm:$0xff]  }
 0x23a   :  { %3458 = vmatmul.mubr.bf16.gmra.mrb[80].mxu0 %v5858_v25  ;;  %5043 = vmatprep.mubr.bf16.mxu1 %v5867_v29  ;;  %v5874_v29 = vld [vmem:[%s7827_s0 + $0x6d8] ss:$36 sps:$4 sm:$0xff]  }
 0x23b   :  { %3465 = vmatprep.mubr.bf16.mxu0 %v5861_v31 }
 0x23c   :  { %v7194_v32 = vpop.f32.mrb[64].mxu1 }
 0x23d   :  { %v2851_v35 = vpop.f32.mrb[65].mxu1 }
 0x23e   :  { %v7199_v39 = vpop.f32.mrb[66].mxu1  ;;  %v5877_v35 = vld [vmem:[%s7827_s0 + $0x724] ss:$36 sps:$4 sm:$0xff]  }
 0x23f   :  { %v2854_v27 = vpop.f32.mrb[67].mxu1 }
 0x241   :  { %5044 = vmatmul.mubr.bf16.gmra.mrb[172].mxu1 %v5868_v36 }
 0x242   :  { %3466 = vmatmul.mubr.bf16.gmra.mrb[84].mxu0 %v5863_v40  ;;  %5047 = vmatprep.mubr.bf16.mxu1 %v5875_v41  ;;  %v5900_v41 = vld [vmem:[%s7827_s0 + $0x8d8] ss:$36 sps:$4 sm:$0xff]  }
 0x243   :  { %3473 = vmatprep.mubr.bf16.mxu0 %v5864_v44  ;;  %v5879_v44 = vld [vmem:[%s7827_s0 + $0x720] ss:$36 sps:$4 sm:$0xff]  }
 0x244   :  { %v7210_v45 = vpop.f32.mrb[68].mxu1 }
 0x245   :  { %v2859_v48 = vpop.f32.mrb[69].mxu1 }
 0x246   :  { %v7215_v51 = vpop.f32.mrb[70].mxu1 }
 0x247   :  { %v2862_v57 = vpop.f32.mrb[71].mxu1 }
 0x249   :  { %5048 = vmatmul.mubr.bf16.gmra.mrb[176].mxu1 %v5876_v49  ;;  %v5880_v49 = vld [vmem:[%s7827_s0 + $0x76c] ss:$36 sps:$4 sm:$0xff]  }
 0x24a   :  { %3474 = vmatmul.mubr.bf16.gmra.mrb[88].mxu0 %v5866_v52  ;;  %5051 = vmatprep.mubr.bf16.mxu1 %v5883_v56 }
 0x24b   :  { %3481 = vmatprep.mubr.bf16.mxu0 %v5869_v61  ;;  %v5882_v61 = vld [vmem:[%s7827_s0 + $0x768] ss:$36 sps:$4 sm:$0xff]  }
 0x24c   :  { %v7226_v62 = vpop.f32.mrb[72].mxu1 }
 0x24d   :  { %v2867_v1 = vpop.f32.mrb[73].mxu1 }
 0x24e   :  { %v7231_v7 = vpop.f32.mrb[74].mxu1 }
 0x24f   :  { %v2870_v14 = vpop.f32.mrb[75].mxu1 }
 0x251   :  { %5052 = vmatmul.mubr.bf16.gmra.mrb[180].mxu1 %v5884_v4  ;;  %v5885_v4 = vld [vmem:[%s7827_s0 + $0x7b4] ss:$36 sps:$4 sm:$0xff]  }
 0x252   :  { %3482 = vmatmul.mubr.bf16.gmra.mrb[92].mxu0 %v5871_v9  ;;  %5055 = vmatprep.mubr.bf16.mxu1 %v5891_v12 }
 0x253   :  { %3489 = vmatprep.mubr.bf16.mxu0 %v5872_v15 }
 0x254   :  { %v7242_v17 = vpop.f32.mrb[76].mxu1 }
 0x255   :  { %v2875_v21 = vpop.f32.mrb[77].mxu1 }
 0x256   :  { %v7247_v25 = vpop.f32.mrb[78].mxu1 }
 0x257   :  { %v2878_v31 = vpop.f32.mrb[79].mxu1 }
 0x258   :  { %v5888_v31 = vld [vmem:[%s7827_s0 + $0x7fc] ss:$36 sps:$4 sm:$0xff]  }
 0x259   :  { %5056 = vmatmul.mubr.bf16.gmra.mrb[184].mxu1 %v5892_v22  ;;  %v5887_v22 = vld [vmem:[%s7827_s0 + $0x7b0] ss:$36 sps:$4 sm:$0xff]  }
 0x25a   :  { %3490 = vmatmul.mubr.bf16.gmra.mrb[96].mxu0 %v5874_v29  ;;  %5059 = vmatprep.mubr.bf16.mxu1 %v5899_v30 }
 0x25b   :  { %3497 = vmatprep.mubr.bf16.mxu0 %v5877_v35 }
 0x25c   :  { %v7258_v36 = vpop.f32.mrb[80].mxu1 }
 0x25d   :  { %v2883_v40 = vpop.f32.mrb[81].mxu1 }
 0x25e   :  { %v7263_v27 = vpop.f32.mrb[82].mxu1 }
 0x25f   :  { %v2886_v48 = vpop.f32.mrb[83].mxu1 }
 0x261   :  { %5060 = vmatmul.mubr.bf16.gmra.mrb[188].mxu1 %v5900_v41 }
 0x262   :  { %3498 = vmatmul.mubr.bf16.gmra.mrb[100].mxu0 %v5879_v44  ;;  %4333 = vmatprep.mubr.bf16.mxu1 %v5946_v0 }
 0x263   :  { %3505 = vmatprep.mubr.bf16.mxu0 %v5880_v49 }
 0x264   :  { %v7272_v52 = vpop.f32.mrb[84].mxu1 }
 0x265   :  { %v2891_v56 = vpop.f32.mrb[85].mxu1 }
 0x266   :  { %v7274_v57 = vpop.f32.mrb[86].mxu1 }
 0x267   :  { %v2894_v1 = vpop.f32.mrb[87].mxu1 }
 0x26a   :  { %3506 = vmatmul.mubr.bf16.gmra.mrb[104].mxu0 %v5882_v61  ;;  %v5890_v61 = vld [vmem:[%s7827_s0 + $0x7f8] ss:$36 sps:$4 sm:$0xff]  }
 0x26b   :  { %3513 = vmatprep.mubr.bf16.mxu0 %v5885_v4  ;;  %v5893_v4 = vld [vmem:[%s7827_s0 + $0x844] ss:$36 sps:$4 sm:$0xff]  }
 0x26c   :  { %v7282_v9 = vpop.f32.mrb[88].mxu1 }
 0x26d   :  { %v3299_v0 = vpop.f32.mrb[0].mxu0  ;;  %v2899_v12 = vpop.f32.mrb[89].mxu1 }
 0x26e   :  { %v7285_v14 = vadd.f32 %v3299_v0, %v6664_v50  ;;  %v3301_v15 = vpop.f32.mrb[1].mxu0  ;;  %v7287_v21 = vpop.f32.mrb[90].mxu1 }
 0x26f   :  { %7835 = vst [vmem:[#allocation2_spill] sm:$0xff] %v7287_v21  ;;  %v3302_v29 = vpop.f32.mrb[2].mxu0  ;;  %v2902_v30 = vpop.f32.mrb[91].mxu1 }
 0x270   :  { %v7296_v35 = vadd.f32 %v3302_v29, %v6675_v55  ;;  %v3304_v40 = vpop.f32.mrb[3].mxu0 }
 0x271   :  { %v5895_v40 = vld [vmem:[%s7827_s0 + $0x840] ss:$36 sps:$4 sm:$0xff]  }
 0x272   :  { %3514 = vmatmul.mubr.bf16.gmra.mrb[108].mxu0 %v5887_v22 }
 0x273   :  { %3521 = vmatprep.mubr.bf16.mxu0 %v5888_v31 }
 0x274   :  { %v7298_v50 = vpop.f32.mrb[92].mxu1 }
 0x275   :  { %7836 = vst [vmem:[#allocation3_spill] sm:$0xff] %v7298_v50  ;;  %v3307_v41 = vpop.f32.mrb[4].mxu0  ;;  %v2907_v44 = vpop.f32.mrb[93].mxu1 }
 0x276   :  { %v7301_v48 = vadd.f32 %v3307_v41, %v6680_v58  ;;  %v3309_v49 = vpop.f32.mrb[5].mxu0  ;;  %v7303_v56 = vpop.f32.mrb[94].mxu1  ;;  %v5896_v44 = vld [vmem:[%s7827_s0 + $0x88c] ss:$36 sps:$4 sm:$0xff]  }
 0x277   :  { %7837 = vst [vmem:[#allocation4_spill] sm:$0xff] %v7303_v56  ;;  %v3310_v1 = vpop.f32.mrb[6].mxu0  ;;  %v2910_v55 = vpop.f32.mrb[95].mxu1 }
 0x278   :  { %v7312_v0 = vadd.f32 %v3310_v1, %v6691_v63  ;;  %v3312_v12 = vpop.f32.mrb[7].mxu0 }
 0x27a   :  { %3522 = vmatmul.mubr.bf16.gmra.mrb[112].mxu0 %v5890_v61 }
 0x27b   :  { %3529 = vmatprep.mubr.bf16.mxu0 %v5893_v4 }
 0x27c   :  { %v7314_v58 = vpop.f32.mrb[96].mxu1 }
 0x27d   :  { %7838 = vst [vmem:[#allocation5_spill] sm:$0xff] %v7314_v58  ;;  %v3315_v15 = vpop.f32.mrb[8].mxu0  ;;  %v2915_v22 = vpop.f32.mrb[97].mxu1 }
 0x27e   :  { %v7317_v29 = vadd.f32 %v3315_v15, %v6696_v3  ;;  %v3317_v30 = vpop.f32.mrb[9].mxu0  ;;  %v7319_v31 = vpop.f32.mrb[98].mxu1  ;;  %v5898_v22 = vld [vmem:[%s7827_s0 + $0x888] ss:$36 sps:$4 sm:$0xff]  }
 0x27f   :  { %7839 = vst [vmem:[#allocation6_spill] sm:$0xff] %v7319_v31  ;;  %v3318_v41 = vpop.f32.mrb[10].mxu0  ;;  %v2918_v63 = vpop.f32.mrb[99].mxu1 }
 0x280   :  { %v7328_v49 = vadd.f32 %v3318_v41, %v6707_v8  ;;  %v3320_v61 = vpop.f32.mrb[11].mxu0 }
 0x282   :  { %3530 = vmatmul.mubr.bf16.gmra.mrb[116].mxu0 %v5895_v40  ;;  %v5901_v40 = vld [vmem:[%s7827_s0 + $0x8d4] ss:$36 sps:$4 sm:$0xff]  }
 0x283   :  { %3537 = vmatprep.mubr.bf16.mxu0 %v5896_v44 }
 0x284   :  { %v7330_v3 = vpop.f32.mrb[100].mxu1 }
 0x285   :  { %7840 = vst [vmem:[#allocation7_spill] sm:$0xff] %v7330_v3  ;;  %v3323_v1 = vpop.f32.mrb[12].mxu0  ;;  %v2923_v55 = vpop.f32.mrb[101].mxu1 }
 0x286   :  { %v7333_v4 = vadd.f32 %v3323_v1, %v6712_v11  ;;  %v3325_v12 = vpop.f32.mrb[13].mxu0  ;;  %v7335_v15 = vpop.f32.mrb[102].mxu1 }
 0x287   :  { %7841 = vst [vmem:[#allocation8_spill] sm:$0xff] %v7335_v15  ;;  %v3326_v30 = vpop.f32.mrb[14].mxu0  ;;  %v2926_v8 = vpop.f32.mrb[103].mxu1 }
 0x288   :  { %v7344_v41 = vadd.f32 %v3326_v30, %v6723_v16  ;;  %v3328_v63 = vpop.f32.mrb[15].mxu0  ;;  %v5903_v8 = vld [vmem:[%s7827_s0 + $0x8d0] ss:$36 sps:$4 sm:$0xff]  }
 0x28a   :  { %3538 = vmatmul.mubr.bf16.gmra.mrb[120].mxu0 %v5898_v22 }
 0x28b   :  { %3545 = vmatprep.mubr.bf16.mxu0 %v5901_v40 }
 0x28c   :  { %v7346_v11 = vpop.f32.mrb[104].mxu1 }
 0x28d   :  { %7842 = vst [vmem:[#allocation9_spill] sm:$0xff] %v7346_v11  ;;  %v3331_v44 = vpop.f32.mrb[16].mxu0  ;;  %v2931_v61 = vpop.f32.mrb[105].mxu1 }
 0x28e   :  { %v7349_v1 = vadd.f32 %v3331_v44, %v6728_v19  ;;  %v3333_v55 = vpop.f32.mrb[17].mxu0  ;;  %v7351_v12 = vpop.f32.mrb[106].mxu1 }
 0x28f   :  { %7843 = vst [vmem:[#allocation10_spill] sm:$0xff] %v7351_v12  ;;  %v3334_v15 = vpop.f32.mrb[18].mxu0  ;;  %v2934_v16 = vpop.f32.mrb[107].mxu1  ;;  %v5904_v12 = vld [vmem:[%s7828_s4] ss:$8 sps:$4 sm:$0xff]  }
 0x290   :  { %v7357_v30 = vadd.f32 %v3334_v15, %v6739_v24  ;;  %v3336_v22 = vpop.f32.mrb[19].mxu0  ;;  %v5906_v24 = vld [vmem:[%s7828_s4 + $0x4] ss:$8 sps:$4 sm:$0xff]  }
 0x291   :  { %4301 = vmatprep.subr.bf16.mxu1 %v5906_v24 }
 0x292   :  { %3546 = vmatmul.mubr.bf16.gmra.mrb[124].mxu0 %v5903_v8  ;;  %4302 = vmatpush1.bf16.msra.mxu1 %v5904_v12 }
 0x294   :  { %v7359_v40 = vpop.f32.mrb[108].mxu1 }
 0x295   :  { %7844 = vst [vmem:[#allocation11_spill] sm:$0xff] %v7359_v40  ;;  %v3339_v63 = vpop.f32.mrb[20].mxu0  ;;  %v2939_v61 = vpop.f32.mrb[109].mxu1 }
 0x296   :  { %v7362_v19 = vadd.f32 %v3339_v63, %v6744_v28  ;;  %v3341_v44 = vpop.f32.mrb[21].mxu0  ;;  %v7364_v55 = vpop.f32.mrb[110].mxu1 }
 0x297   :  { %7845 = vst [vmem:[#allocation12_spill] sm:$0xff] %v7364_v55  ;;  %v3342_v16 = vpop.f32.mrb[22].mxu0  ;;  %v2942_v11 = vpop.f32.mrb[111].mxu1 }
 0x298   :  { %v7373_v15 = vadd.f32 %v3342_v16, %v6755_v33  ;;  %v3344_v8 = vpop.f32.mrb[23].mxu0 }
 0x299   :  { %v5907_v8 = vld [vmem:[%s7828_s4 + $0x10] ss:$8 sps:$4 sm:$0xff]  }
 0x29c   :  { %v7375_v28 = vpop.f32.mrb[112].mxu1 }
 0x29d   :  { %7846 = vst [vmem:[#allocation13_spill] sm:$0xff] %v7375_v28  ;;  %v3347_v22 = vpop.f32.mrb[24].mxu0  ;;  %v2947_v63 = vpop.f32.mrb[113].mxu1 }
 0x29e   :  { %v7378_v61 = vadd.f32 %v3347_v22, %v6764_v37  ;;  %v3349_v44 = vpop.f32.mrb[25].mxu0  ;;  %v7380_v55 = vpop.f32.mrb[114].mxu1  ;;  %v5909_v37 = vld [vmem:[%s7828_s4 + $0x14] ss:$8 sps:$4 sm:$0xff]  }
 0x29f   :  { %7847 = vst [vmem:[#allocation14_spill] sm:$0xff] %v7380_v55  ;;  %v3350_v11 = vpop.f32.mrb[26].mxu0  ;;  %v2950_v40 = vpop.f32.mrb[115].mxu1  ;;  %4303 = vmatprep.subr.bf16.mxu1 %v5909_v37 }
 0x2a0   :  { %v7383_v3 = vadd.f32 %v3350_v11, %v6778_v42  ;;  %v3352_v33 = vpop.f32.mrb[27].mxu0  ;;  %4304 = vmatpush1.bf16.msra.mxu1 %v5907_v8 }
 0x2a4   :  { %v7385_v16 = vpop.f32.mrb[116].mxu1 }
 0x2a5   :  { %7848 = vst [vmem:[#allocation15_spill] sm:$0xff] %v7385_v16  ;;  %v3355_v24 = vpop.f32.mrb[28].mxu0  ;;  %v2955_v12 = vpop.f32.mrb[117].mxu1 }
 0x2a6   :  { %v7394_v22 = vadd.f32 %v3355_v24, %v6786_v46  ;;  %v3357_v40 = vpop.f32.mrb[29].mxu0  ;;  %v7396_v63 = vpop.f32.mrb[118].mxu1 }
 0x2a7   :  { %7849 = vst [vmem:[#allocation16_spill] sm:$0xff] %v7396_v63  ;;  %v3358_v42 = vpop.f32.mrb[30].mxu0  ;;  %v2958_v44 = vpop.f32.mrb[119].mxu1 }
 0x2a8   :  { %v7399_v11 = vadd.f32 %v3358_v42, %v6800_v53  ;;  %v3360_v33 = vpop.f32.mrb[31].mxu0 }
 0x2ac   :  { %v7401_v12 = vpop.f32.mrb[120].mxu1 }
 0x2ad   :  { %7850 = vst [vmem:[#allocation17_spill] sm:$0xff] %v7401_v12  ;;  %v3363_v16 = vpop.f32.mrb[32].mxu0  ;;  %v2963_v55 = vpop.f32.mrb[121].mxu1 }
 0x2ae   :  { %v7404_v28 = vadd.f32 %v3363_v16, %v6808_v59  ;;  %v3365_v46 = vpop.f32.mrb[33].mxu0  ;;  %v7406_v24 = vpop.f32.mrb[122].mxu1 }
 0x2af   :  { %7851 = vst [vmem:[#allocation18_spill] sm:$0xff] %v7406_v24  ;;  %v3366_v40 = vpop.f32.mrb[34].mxu0  ;;  %v2966_v63 = vpop.f32.mrb[123].mxu1 }
 0x2b0   :  { %v7409_v44 = vadd.f32 %v3366_v40, %v6819_v2  ;;  %v3368_v37 = vpop.f32.mrb[35].mxu0  ;;  %v7424_v2 = vld [vmem:[%s7829_s2] ss:$0 sm:$0xff] }
 0x2b4   :  { %v7411_v53 = vpop.f32.mrb[124].mxu1 }
 0x2b5   :  { %7852 = vst [vmem:[#allocation19_spill] sm:$0xff] %v7411_v53  ;;  %v3371_v42 = vpop.f32.mrb[36].mxu0  ;;  %v2971_v8 = vpop.f32.mrb[125].mxu1 }
 0x2b6   :  { %v7414_v33 = vadd.f32 %v3371_v42, %v6824_v6  ;;  %v3373_v55 = vpop.f32.mrb[37].mxu0  ;;  %v7416_v12 = vpop.f32.mrb[126].mxu1 }
 0x2b7   :  { %7853 = vst [vmem:[#allocation20_spill] sm:$0xff] %v7416_v12  ;;  %v3374_v59 = vpop.f32.mrb[38].mxu0  ;;  %v2974_v16 = vpop.f32.mrb[127].mxu1 }
 0x2b8   :  { %v7419_v46 = vadd.f32 %v3374_v59, %v6835_v13  ;;  %v3376_v63 = vpop.f32.mrb[39].mxu0  ;;  %v7435_v59 = vld [vmem:[%s7830_s3] ss:$0 sm:$0xff] }
 0x2bc   :  { %v5001_v24 = vpop.f32.mrb[128].mxu1 }
 0x2bd   :  { %v3379_v40 = vpop.f32.mrb[40].mxu0  ;;  %v3597_v37 = vadd.f32 %v7301_v48, %v5001_v24  ;;  %v3588_v6 = vpop.f32.mrb[129].mxu1 }
 0x2be   :  { %v7428_v42 = vadd.f32 %v3379_v40, %v6846_v20  ;;  %v3381_v8 = vpop.f32.mrb[41].mxu0  ;;  %v3589_v55 = vadd.f32 %v7285_v14, %v3588_v6  ;;  %v5002_v16 = vpop.f32.mrb[130].mxu1 }
 0x2bf   :  { %v3852_v13 = vmul.f32 %v7424_v2, %v3597_v37  ;;  %v3382_v63 = vpop.f32.mrb[42].mxu0  ;;  %v3600_v12 = vadd.f32 %v7312_v0, %v5002_v16  ;;  %v3591_v53 = vpop.f32.mrb[131].mxu1  ;;  %v5910_v8 = vld [vmem:[%s7828_s4 + $0x20] ss:$8 sps:$4 sm:$0xff]   ;;  %v5912_v0 = vld [vmem:[%s7828_s4 + $0x24] ss:$8 sps:$4 sm:$0xff]  }
 0x2c0   :  { %v3850_v48 = vmul.f32 %v7424_v2, %v3589_v55  ;;  %v7440_v20 = vadd.f32 %v3382_v63, %v6857_v26  ;;  %v3384_v24 = vpop.f32.mrb[43].mxu0  ;;  %v3592_v14 = vadd.f32 %v7296_v35, %v3591_v53  ;;  %v5915_v35 = vld [vmem:[%s7828_s4 + $0x34] ss:$8 sps:$4 sm:$0xff]   ;;  %4305 = vmatprep.subr.bf16.mxu1 %v5912_v0 }
 0x2c1   :  { %v3853_v40 = vmul.f32 %v7424_v2, %v3600_v12  ;;  %v3923_v26 = vadd.f32 %v7435_v59, %v3852_v13  ;;  %4306 = vmatpush1.bf16.msra.mxu1 %v5910_v8  ;;  %v5913_v24 = vld [vmem:[%s7828_s4 + $0x30] ss:$8 sps:$4 sm:$0xff]  }
 0x2c2   :  { %v3921_v37 = vadd.f32 %v7435_v59, %v3850_v48  ;;  %v3851_v6 = vmul.f32 %v7424_v2, %v3592_v14  ;;  %4307 = vmatprep.subr.bf16.mxu1 %v5915_v35 }
 0x2c3   :  { %v3924_v55 = vadd.f32 %v7435_v59, %v3853_v40  ;;  %v3987_v40 = vmax.f32 %v3923_v26, 0.0 }
 0x2c4   :  { %v3922_v12 = vadd.f32 %v7435_v59, %v3851_v6  ;;  %v5005_v53 = vpop.f32.mrb[132].mxu1  ;;  %v3985_v13 = vmax.f32 %v3921_v37, 0.0 }
 0x2c5   :  { %v3387_v16 = vpop.f32.mrb[44].mxu0  ;;  %v3613_v63 = vadd.f32 %v7333_v4, %v5005_v53  ;;  %v3604_v48 = vpop.f32.mrb[133].mxu1  ;;  %4308 = vmatpush1.bf16.msra.mxu1 %v5913_v24  ;;  %v3988_v35 = vmax.f32 %v3924_v55, 0.0 }
 0x2c6   :  { %v3986_v14 = vmax.f32 %v3922_v12, 0.0  ;;  %v7463_v31 = vadd.f32 %v3387_v16, %v7114_v34  ;;  %v3389_v58 = vpop.f32.mrb[45].mxu0  ;;  %v3605_v6 = vadd.f32 %v7317_v29, %v3604_v48  ;;  %v5006_v0 = vpop.f32.mrb[134].mxu1 }
 0x2c7   :  { %v3856_v56 = vmul.f32 %v7424_v2, %v3613_v63  ;;  %v3390_v4 = vpop.f32.mrb[46].mxu0  ;;  %v3616_v8 = vadd.f32 %v7344_v41, %v5006_v0  ;;  %v3607_v53 = vpop.f32.mrb[135].mxu1 }
 0x2c8   :  { %v4049_v50 = vadd.f32 %v3986_v14, %v3985_v13  ;;  %v3854_v21 = vmul.f32 %v7424_v2, %v3605_v6  ;;  %v7470_v37 = vadd.f32 %v3390_v4, %v7119_v38  ;;  %v3392_v34 = vpop.f32.mrb[47].mxu0  ;;  %v3608_v58 = vadd.f32 %v7328_v49, %v3607_v53 }
 0x2c9   :  { %v3857_v29 = vmul.f32 %v7424_v2, %v3616_v8  ;;  %v3927_v41 = vadd.f32 %v7435_v59, %v3856_v56 }
 0x2ca   :  { %v4050_v26 = vadd.f32 %v4049_v50, %v3987_v40  ;;  %v3925_v12 = vadd.f32 %v7435_v59, %v3854_v21  ;;  %v3855_v16 = vmul.f32 %v7424_v2, %v3608_v58 }
 0x2cb   :  { %v3928_v14 = vadd.f32 %v7435_v59, %v3857_v29  ;;  %v3991_v4 = vmax.f32 %v3927_v41, 0.0 }
 0x2cc   :  { %v3989_v63 = vmax.f32 %v3925_v12, 0.0  ;;  %v4051_v48 = vadd.f32 %v4050_v26, %v3988_v35  ;;  %v3926_v13 = vadd.f32 %v7435_v59, %v3855_v16  ;;  %v5009_v38 = vpop.f32.mrb[136].mxu1 }
 0x2cd   :  { %v3395_v6 = vpop.f32.mrb[48].mxu0  ;;  %v3629_v49 = vadd.f32 %v7362_v19, %v5009_v38  ;;  %v3620_v0 = vpop.f32.mrb[137].mxu1 }
 0x2ce   :  { %v4052_v24 = vadd.f32 %v4051_v48, %v3989_v63  ;;  %v3990_v55 = vmax.f32 %v3926_v13, 0.0  ;;  %v7481_v50 = vadd.f32 %v3395_v6, %v7130_v43  ;;  %v3397_v21 = vpop.f32.mrb[49].mxu0  ;;  %v3621_v40 = vadd.f32 %v7349_v1, %v3620_v0  ;;  %v5010_v56 = vpop.f32.mrb[138].mxu1 }
 0x2cf   :  { %v3860_v8 = vmul.f32 %v7424_v2, %v3629_v49  ;;  %v3398_v53 = vpop.f32.mrb[50].mxu0  ;;  %v3632_v34 = vadd.f32 %v7373_v15, %v5010_v56  ;;  %v3623_v58 = vpop.f32.mrb[139].mxu1  ;;  %v3992_v1 = vmax.f32 %v3928_v14, 0.0 }
 0x2d0   :  { %v4053_v29 = vadd.f32 %v4052_v24, %v3990_v55  ;;  %v3858_v19 = vmul.f32 %v7424_v2, %v3621_v40  ;;  %v7488_v35 = vadd.f32 %v3398_v53, %v7135_v47  ;;  %v3400_v26 = vpop.f32.mrb[51].mxu0  ;;  %v3624_v43 = vadd.f32 %v7357_v30, %v3623_v58 }
 0x2d1   :  { %v3861_v12 = vmul.f32 %v7424_v2, %v3632_v34  ;;  %v3931_v15 = vadd.f32 %v7435_v59, %v3860_v8 }
 0x2d2   :  { %v4054_v16 = vadd.f32 %v4053_v29, %v3991_v4  ;;  %v3929_v41 = vadd.f32 %v7435_v59, %v3858_v19  ;;  %v3859_v63 = vmul.f32 %v7424_v2, %v3624_v43 }
 0x2d3   :  { %v3932_v47 = vadd.f32 %v7435_v59, %v3861_v12  ;;  %v3995_v34 = vmax.f32 %v3931_v15, 0.0 }
 0x2d4   :  { %v4055_v48 = vadd.f32 %v4054_v16, %v3992_v1  ;;  %v3930_v13 = vadd.f32 %v7435_v59, %v3859_v63  ;;  %v5013_v38 = vpop.f32.mrb[140].mxu1  ;;  %v3993_v6 = vmax.f32 %v3929_v41, 0.0 }
 0x2d5   :  { %v3403_v49 = vpop.f32.mrb[52].mxu0  ;;  %v3645_v30 = vadd.f32 %v7394_v22, %v5013_v38  ;;  %v3636_v0 = vpop.f32.mrb[141].mxu1  ;;  %v3996_v12 = vmax.f32 %v3932_v47, 0.0 }
 0x2d6   :  { %v4056_v24 = vrot.slane %v4055_v48, 4  ;;  %v3994_v14 = vmax.f32 %v3930_v13, 0.0  ;;  %v7499_v55 = vadd.f32 %v3403_v49, %v7146_v54  ;;  %v3405_v21 = vpop.f32.mrb[53].mxu0  ;;  %v3637_v40 = vadd.f32 %v7378_v61, %v3636_v0  ;;  %v5014_v56 = vpop.f32.mrb[142].mxu1 }
 0x2d7   :  { %v3406_v4 = vpop.f32.mrb[54].mxu0  ;;  %v3648_v8 = vadd.f32 %v7399_v11, %v5014_v56  ;;  %v3639_v53 = vpop.f32.mrb[143].mxu1  ;;  %v3864_v54 = vmul.f32 %v7424_v2, %v3645_v30 }
 0x2d8   :  { %v4062_v58 = vadd.f32 %v3994_v14, %v3993_v6  ;;  %v3862_v29 = vmul.f32 %v7424_v2, %v3637_v40  ;;  %v7505_v22 = vadd.f32 %v3406_v4, %v7151_v60  ;;  %v3408_v19 = vpop.f32.mrb[55].mxu0  ;;  %v4057_v26 = vadd.f32 %v4056_v24, %v4055_v48 }
 0x2d9   :  { %v3640_v43 = vadd.f32 %v7383_v3, %v3639_v53  ;;  %v3865_v11 = vmul.f32 %v7424_v2, %v3648_v8  ;;  %v3935_v60 = vadd.f32 %v7435_v59, %v3864_v54 }
 0x2da   :  { %v4063_v61 = vadd.f32 %v4062_v58, %v3995_v34  ;;  %v3933_v1 = vadd.f32 %v7435_v59, %v3862_v29  ;;  %v4058_v13 = vrot.slane %v4057_v26, 2 }
 0x2db   :  { %v3863_v16 = vmul.f32 %v7424_v2, %v3640_v43  ;;  %v3936_v14 = vadd.f32 %v7435_v59, %v3865_v11 }
 0x2dc   :  { %v3997_v41 = vmax.f32 %v3933_v1, 0.0  ;;  %v4064_v63 = vadd.f32 %v4063_v61, %v3996_v12  ;;  %v5017_v15 = vpop.f32.mrb[144].mxu1  ;;  %v4059_v58 = vadd.f32 %v4058_v13, %v4057_v26  ;;  %v5921_v26 = vld [vmem:[%s7828_s4 + $0x54] ss:$8 sps:$4 sm:$0xff]  }
 0x2dd   :  { %v3934_v48 = vadd.f32 %v7435_v59, %v3863_v16  ;;  %v3411_v38 = vpop.f32.mrb[56].mxu0  ;;  %v3661_v6 = vadd.f32 %v7414_v33, %v5017_v15  ;;  %v3652_v3 = vpop.f32.mrb[145].mxu1  ;;  %v4000_v12 = vmax.f32 %v3936_v14, 0.0 }
 0x2de   :  { %v4065_v47 = vadd.f32 %v4064_v63, %v3997_v41  ;;  %v7516_v49 = vadd.f32 %v3411_v38, %v7162_v5  ;;  %v3413_v30 = vpop.f32.mrb[57].mxu0  ;;  %v3653_v0 = vadd.f32 %v7404_v28, %v3652_v3  ;;  %v5018_v24 = vpop.f32.mrb[146].mxu1  ;;  %v3999_v28 = vmax.f32 %v3935_v60, 0.0 }
 0x2df   :  { %v3998_v21 = vmax.f32 %v3934_v48, 0.0  ;;  %v3868_v40 = vmul.f32 %v7424_v2, %v3661_v6  ;;  %v3414_v56 = vpop.f32.mrb[58].mxu0  ;;  %v3664_v4 = vadd.f32 %v7419_v46, %v5018_v24  ;;  %v3655_v8 = vpop.f32.mrb[147].mxu1  ;;  %v5916_v46 = vld [vmem:[%s7828_s4 + $0x40] ss:$8 sps:$4 sm:$0xff]   ;;  %v4060_v16 = vrot.slane %v4059_v58, 1 }
 0x2e0   :  { %v3866_v33 = vmul.f32 %v7424_v2, %v3653_v0  ;;  %v7524_v53 = vadd.f32 %v3414_v56, %v7167_v10  ;;  %v3416_v5 = vpop.f32.mrb[59].mxu0  ;;  %v3656_v34 = vadd.f32 %v7409_v44, %v3655_v8  ;;  %v5918_v10 = vld [vmem:[%s7828_s4 + $0x44] ss:$8 sps:$4 sm:$0xff]   ;;  %v5919_v48 = vld [vmem:[%s7828_s4 + $0x50] ss:$8 sps:$4 sm:$0xff]  }
 0x2e1   :  { %v4066_v29 = vadd.f32 %v4065_v47, %v3998_v21  ;;  %v3869_v19 = vmul.f32 %v7424_v2, %v3664_v4  ;;  %v3939_v44 = vadd.f32 %v7435_v59, %v3868_v40  ;;  %4309 = vmatprep.subr.bf16.mxu1 %v5918_v10 }
 0x2e2   :  { %v3937_v54 = vadd.f32 %v7435_v59, %v3866_v33  ;;  %v3867_v43 = vmul.f32 %v7424_v2, %v3656_v34  ;;  %4310 = vmatpush1.bf16.msra.mxu1 %v5916_v46 }
 0x2e3   :  { %v4067_v61 = vadd.f32 %v4066_v29, %v3999_v28  ;;  %v3940_v63 = vadd.f32 %v7435_v59, %v3869_v19  ;;  %4311 = vmatprep.subr.bf16.mxu1 %v5921_v26  ;;  %v4003_v14 = vmax.f32 %v3939_v44, 0.0 }
 0x2e4   :  { %v3938_v1 = vadd.f32 %v7435_v59, %v3867_v43  ;;  %v5021_v11 = vpop.f32.mrb[148].mxu1  ;;  %v4001_v38 = vmax.f32 %v3937_v54, 0.0 }
 0x2e5   :  { %v4068_v41 = vadd.f32 %v4067_v61, %v4000_v12  ;;  %v3419_v15 = vpop.f32.mrb[60].mxu0  ;;  %v3677_v13 = vadd.f32 %v7463_v31, %v5021_v11  ;;  %v3668_v60 = vpop.f32.mrb[149].mxu1  ;;  %v4004_v29 = vmax.f32 %v3940_v63, 0.0 }
 0x2e6   :  { %v4002_v6 = vmax.f32 %v3938_v1, 0.0  ;;  %v7547_v3 = vadd.f32 %v3419_v15, %v7178_v18  ;;  %v3421_v47 = vpop.f32.mrb[61].mxu0  ;;  %v3669_v30 = vadd.f32 %v7428_v42, %v3668_v60  ;;  %v5022_v0 = vpop.f32.mrb[150].mxu1  ;;  %v4061_v42 = vadd.f32 %v4060_v16, %v4059_v58  ;;  %4312 = vmatpush1.bf16.msra.mxu1 %v5919_v48 }
 0x2e7   :  { %v4069_v24 = vrot.slane %v4068_v41, 4  ;;  %v3872_v31 = vmul.f32 %v7424_v2, %v3677_v13  ;;  %v3422_v21 = vpop.f32.mrb[62].mxu0  ;;  %v3680_v40 = vadd.f32 %v7470_v37, %v5022_v0  ;;  %v3671_v56 = vpop.f32.mrb[151].mxu1 }
 0x2e8   :  { %v4075_v4 = vadd.f32 %v4002_v6, %v4001_v38  ;;  %v3870_v8 = vmul.f32 %v7424_v2, %v3669_v30  ;;  %v7554_v33 = vadd.f32 %v3422_v21, %v7183_v23  ;;  %v3424_v18 = vpop.f32.mrb[63].mxu0  ;;  %v3672_v5 = vadd.f32 %v7440_v20, %v3671_v56 }
 0x2e9   :  { %v4070_v34 = vadd.f32 %v4069_v24, %v4068_v41  ;;  %v3873_v28 = vmul.f32 %v7424_v2, %v3680_v40  ;;  %v3943_v46 = vadd.f32 %v7435_v59, %v3872_v31  ;;  %v4153_v20 = vpack.c.bf16 %v4061_v42, %v4061_v42 }
 0x2ea   :  { %v4076_v19 = vadd.f32 %v4075_v4, %v4003_v14  ;;  %v3941_v54 = vadd.f32 %v7435_v59, %v3870_v8  ;;  %v3871_v37 = vmul.f32 %v7424_v2, %v3672_v5 }
 0x2eb   :  { %v4071_v43 = vrot.slane %v4070_v34, 2  ;;  %v3944_v44 = vadd.f32 %v7435_v59, %v3873_v28  ;;  %v4007_v38 = vmax.f32 %v3943_v46, 0.0  ;;  %v4197_v5 = vunpack.c.l.b16 %v4153_v20 }
 0x2ec   :  { %v4005_v10 = vmax.f32 %v3941_v54, 0.0  ;;  %v4077_v23 = vadd.f32 %v4076_v19, %v4004_v29  ;;  %v3942_v12 = vadd.f32 %v7435_v59, %v3871_v37  ;;  %v5025_v61 = vpop.f32.mrb[152].mxu1 }
 0x2ed   :  { %v4072_v58 = vadd.f32 %v4071_v43, %v4070_v34  ;;  %v3427_v26 = vpop.f32.mrb[64].mxu0  ;;  %v3693_v1 = vadd.f32 %v7499_v55, %v5025_v61  ;;  %v3684_v11 = vpop.f32.mrb[153].mxu1  ;;  %v4008_v40 = vmax.f32 %v3944_v44, 0.0 }
 0x2ee   :  { %v4078_v16 = vadd.f32 %v4077_v23, %v4005_v10  ;;  %v4006_v41 = vmax.f32 %v3942_v12, 0.0  ;;  %v7565_v63 = vadd.f32 %v3427_v26, %v7194_v32  ;;  %v3429_v15 = vpop.f32.mrb[65].mxu0  ;;  %v3685_v13 = vadd.f32 %v7481_v50, %v3684_v11  ;;  %v5026_v60 = vpop.f32.mrb[154].mxu1 }
 0x2ef   :  { %v4073_v48 = vrot.slane %v4072_v58, 1  ;;  %v3876_v6 = vmul.f32 %v7424_v2, %v3693_v1  ;;  %v3430_v47 = vpop.f32.mrb[66].mxu0  ;;  %v3696_v30 = vadd.f32 %v7505_v22, %v5026_v60  ;;  %v3687_v0 = vpop.f32.mrb[155].mxu1 }
 0x2f0   :  { %v4079_v24 = vadd.f32 %v4078_v16, %v4006_v41  ;;  %v3874_v55 = vmul.f32 %v7424_v2, %v3685_v13  ;;  %v7572_v14 = vadd.f32 %v3430_v47, %v7199_v39  ;;  %v3432_v32 = vpop.f32.mrb[67].mxu0  ;;  %v3688_v31 = vadd.f32 %v7488_v35, %v3687_v0 }
 0x2f1   :  { %v4074_v21 = vadd.f32 %v4073_v48, %v4072_v58  ;;  %v3877_v50 = vmul.f32 %v7424_v2, %v3696_v30  ;;  %v3947_v18 = vadd.f32 %v7435_v59, %v3876_v6 }
 0x2f2   :  { %v4080_v56 = vadd.f32 %v4079_v24, %v4007_v38  ;;  %v3945_v4 = vadd.f32 %v7435_v59, %v3874_v55  ;;  %v3875_v8 = vmul.f32 %v7424_v2, %v3688_v31 }
 0x2f3   :  { %v4154_v22 = vpack.c.bf16 %v4074_v21, %v4074_v21  ;;  %v3948_v29 = vadd.f32 %v7435_v59, %v3877_v50  ;;  %v4011_v58 = vmax.f32 %v3947_v18, 0.0 }
 0x2f4   :  { %v4081_v42 = vadd.f32 %v4080_v56, %v4008_v40  ;;  %v3946_v39 = vadd.f32 %v7435_v59, %v3875_v8  ;;  %v5029_v34 = vpop.f32.mrb[156].mxu1  ;;  %v4009_v35 = vmax.f32 %v3945_v4, 0.0 }
 0x2f5   :  { %v4198_v28 = vunpack.c.l.b16 %v4154_v22  ;;  %v3435_v19 = vpop.f32.mrb[68].mxu0  ;;  %v3709_v54 = vadd.f32 %v7547_v3, %v5029_v34  ;;  %v3700_v37 = vpop.f32.mrb[157].mxu1  ;;  %v4012_v60 = vmax.f32 %v3948_v29, 0.0  ;;  %v5924_v22 = vld [vmem:[%s7828_s4 + $0x64] ss:$8 sps:$4 sm:$0xff]  }
 0x2f6   :  { %v4082_v43 = vrot.slane %v4081_v42, 4  ;;  %v4010_v46 = vmax.f32 %v3946_v39, 0.0  ;;  %v5129_v10 = vadd.f32 %v3435_v19, %v7210_v45  ;;  %v3437_v23 = vpop.f32.mrb[69].mxu0  ;;  %v3701_v12 = vadd.f32 %v7516_v49, %v3700_v37  ;;  %v5030_v61 = vpop.f32.mrb[158].mxu1  ;;  %4313 = vmatprep.subr.bf16.mxu1 %v5924_v22 }
 0x2f7   :  { %v7585_v20 = vsel %vm4205_vm0, %v4198_v28, %v4197_v5  ;;  %v3438_v44 = vpop.f32.mrb[70].mxu0  ;;  %v3712_v26 = vadd.f32 %v7554_v33, %v5030_v61  ;;  %v3703_v1 = vpop.f32.mrb[159].mxu1  ;;  %v3880_v45 = vmul.f32 %v7424_v2, %v3709_v54  ;;  %v5925_v61 = vld [vmem:[%s7828_s4 + $0x70] ss:$8 sps:$4 sm:$0xff]  }
 0x2f8   :  { %v4083_v11 = vadd.f32 %v4082_v43, %v4081_v42  ;;  %v4088_v16 = vadd.f32 %v4010_v46, %v4009_v35  ;;  %v3878_v3 = vmul.f32 %v7424_v2, %v3701_v12  ;;  %v5130_v41 = vadd.f32 %v3438_v44, %v7215_v51  ;;  %v3440_v15 = vpop.f32.mrb[71].mxu0 }
 0x2f9   :  { %v3704_v49 = vadd.f32 %v7524_v53, %v3703_v1  ;;  %v3881_v6 = vmul.f32 %v7424_v2, %v3712_v26  ;;  %v3951_v51 = vadd.f32 %v7435_v59, %v3880_v45 }
 0x2fa   :  { %v4084_v13 = vrot.slane %v4083_v11, 2  ;;  %v4089_v48 = vadd.f32 %v4088_v16, %v4011_v58  ;;  %v3949_v38 = vadd.f32 %v7435_v59, %v3878_v3 }
 0x2fb   :  { %v3879_v33 = vmul.f32 %v7424_v2, %v3704_v49  ;;  %v3952_v18 = vadd.f32 %v7435_v59, %v3881_v6  ;;  %v4015_v37 = vmax.f32 %v3951_v51, 0.0 }
 0x2fc   :  { %v4085_v47 = vadd.f32 %v4084_v13, %v4083_v11  ;;  %v4013_v30 = vmax.f32 %v3949_v38, 0.0  ;;  %v4090_v0 = vadd.f32 %v4089_v48, %v4012_v60  ;;  %v5033_v24 = vpop.f32.mrb[160].mxu1 }
 0x2fd   :  { %v3950_v55 = vadd.f32 %v7435_v59, %v3879_v33  ;;  %v3443_v32 = vpop.f32.mrb[72].mxu0  ;;  %v3725_v31 = vadd.f32 %v5129_v10, %v5033_v24  ;;  %v3716_v53 = vpop.f32.mrb[161].mxu1 }
 0x2fe   :  { %v4086_v21 = vrot.slane %v4085_v47, 1  ;;  %v4091_v50 = vadd.f32 %v4090_v0, %v4013_v30  ;;  %v5131_v40 = vadd.f32 %v3443_v32, %v7226_v62  ;;  %v3445_v56 = vpop.f32.mrb[73].mxu0  ;;  %v3717_v4 = vadd.f32 %v7565_v63, %v3716_v53  ;;  %v5034_v8 = vpop.f32.mrb[162].mxu1  ;;  %v5922_v62 = vld [vmem:[%s7828_s4 + $0x60] ss:$8 sps:$4 sm:$0xff]  }
 0x2ff   :  { %v4014_v5 = vmax.f32 %v3950_v55, 0.0  ;;  %v3884_v42 = vmul.f32 %v7424_v2, %v3725_v31  ;;  %v3446_v39 = vpop.f32.mrb[74].mxu0  ;;  %v3728_v34 = vadd.f32 %v5130_v41, %v5034_v8  ;;  %v3719_v28 = vpop.f32.mrb[163].mxu1  ;;  %4314 = vmatpush1.bf16.msra.mxu1 %v5922_v62 }
 0x300   :  { %v4087_v35 = vadd.f32 %v4086_v21, %v4085_v47  ;;  %v3882_v63 = vmul.f32 %v7424_v2, %v3717_v4  ;;  %v5132_v29 = vadd.f32 %v3446_v39, %v7231_v7  ;;  %v3448_v19 = vpop.f32.mrb[75].mxu0  ;;  %v3720_v54 = vadd.f32 %v7572_v14, %v3719_v28  ;;  %v5927_v7 = vld [vmem:[%s7828_s4 + $0x74] ss:$8 sps:$4 sm:$0xff]  }
 0x301   :  { %v4092_v43 = vadd.f32 %v4091_v50, %v4014_v5  ;;  %v3885_v46 = vmul.f32 %v7424_v2, %v3728_v34  ;;  %v4016_v14 = vmax.f32 %v3952_v18, 0.0  ;;  %v3955_v44 = vadd.f32 %v7435_v59, %v3884_v42  ;;  %4315 = vmatprep.subr.bf16.mxu1 %v5927_v7 }
 0x302   :  { %v4155_v10 = vpack.c.bf16 %v4087_v35, %v4087_v35  ;;  %v3953_v23 = vadd.f32 %v7435_v59, %v3882_v63  ;;  %v3883_v12 = vmul.f32 %v7424_v2, %v3720_v54 }
 0x303   :  { %v4093_v58 = vadd.f32 %v4092_v43, %v4015_v37  ;;  %v3956_v41 = vadd.f32 %v7435_v59, %v3885_v46  ;;  %4316 = vmatpush1.bf16.msra.mxu1 %v5925_v61  ;;  %v4019_v47 = vmax.f32 %v3955_v44, 0.0 }
 0x304   :  { %v4199_v26 = vunpack.c.l.b16 %v4155_v10  ;;  %v3954_v1 = vadd.f32 %v7435_v59, %v3883_v12  ;;  %v5037_v11 = vpop.f32.mrb[164].mxu1  ;;  %v4017_v3 = vmax.f32 %v3953_v23, 0.0 }
 0x305   :  { %v4094_v16 = vadd.f32 %v4093_v58, %v4016_v14  ;;  %v3451_v15 = vpop.f32.mrb[76].mxu0  ;;  %v3732_v45 = vpop.f32.mrb[165].mxu1 }
 0x306   :  { %v7623_v49 = vsel %vm4207_vm1, %v4199_v26, %v7585_v20  ;;  %v4018_v13 = vmax.f32 %v3954_v1, 0.0  ;;  %v5133_v60 = vadd.f32 %v3451_v15, %v7242_v17  ;;  %v3453_v48 = vpop.f32.mrb[77].mxu0  ;;  %v3733_v38 = vadd.f32 %v5131_v40, %v3732_v45  ;;  %v5038_v6 = vpop.f32.mrb[166].mxu1  ;;  %v5928_v20 = vld [vmem:[%s7831_s6 + $0x40] sm:$0xff]  }
 0x307   :  { %v4095_v33 = vrot.slane %v4094_v16, 4  ;;  %v3454_v30 = vpop.f32.mrb[78].mxu0  ;;  %v3735_v0 = vpop.f32.mrb[167].mxu1  ;;  %v4020_v17 = vmax.f32 %v3956_v41, 0.0  ;;  %4961 = vmatprep.subr.bf16.mxu1 %v5928_v20 }
 0x308   :  { %v4101_v24 = vadd.f32 %v4018_v13, %v4017_v3  ;;  %v3741_v51 = vadd.f32 %v5133_v60, %v5037_v11  ;;  %v3886_v55 = vmul.f32 %v7424_v2, %v3733_v38  ;;  %v5134_v32 = vadd.f32 %v3454_v30, %v7247_v25  ;;  %v3456_v31 = vpop.f32.mrb[79].mxu0 }
 0x309   :  { %v4096_v53 = vadd.f32 %v4095_v33, %v4094_v16  ;;  %v3736_v21 = vadd.f32 %v5132_v29, %v3735_v0 }
 0x30a   :  { %v4102_v50 = vadd.f32 %v4101_v24, %v4019_v47  ;;  %v3888_v40 = vmul.f32 %v7424_v2, %v3741_v51  ;;  %v3957_v56 = vadd.f32 %v7435_v59, %v3886_v55  ;;  %v3744_v4 = vadd.f32 %v5134_v32, %v5038_v6 }
 0x30b   :  { %v4097_v8 = vrot.slane %v4096_v53, 2  ;;  %v3887_v22 = vmul.f32 %v7424_v2, %v3736_v21 }
 0x30c   :  { %v4021_v18 = vmax.f32 %v3957_v56, 0.0  ;;  %v4103_v25 = vadd.f32 %v4102_v50, %v4020_v17  ;;  %v3889_v5 = vmul.f32 %v7424_v2, %v3744_v4  ;;  %v5041_v42 = vpop.f32.mrb[168].mxu1  ;;  %v3959_v34 = vadd.f32 %v7435_v59, %v3888_v40 }
 0x30d   :  { %v4098_v39 = vadd.f32 %v4097_v8, %v4096_v53  ;;  %v3958_v28 = vadd.f32 %v7435_v59, %v3887_v22  ;;  %v3459_v62 = vpop.f32.mrb[80].mxu0  ;;  %v3748_v35 = vpop.f32.mrb[169].mxu1 }
 0x30e   :  { %v4104_v63 = vadd.f32 %v4103_v25, %v4021_v18  ;;  %v3960_v29 = vadd.f32 %v7435_v59, %v3889_v5  ;;  %v5135_v19 = vadd.f32 %v3459_v62, %v7258_v36  ;;  %v3461_v54 = vpop.f32.mrb[81].mxu0  ;;  %v5042_v37 = vpop.f32.mrb[170].mxu1  ;;  %v4023_v58 = vmax.f32 %v3959_v34, 0.0 }
 0x30f   :  { %v4099_v43 = vrot.slane %v4098_v39, 1  ;;  %v4022_v46 = vmax.f32 %v3958_v28, 0.0  ;;  %v3462_v10 = vpop.f32.mrb[82].mxu0  ;;  %v3751_v23 = vpop.f32.mrb[171].mxu1 }
 0x310   :  { %v5136_v12 = vadd.f32 %v3462_v10, %v7263_v27  ;;  %v3749_v61 = vadd.f32 %v5135_v19, %v3748_v35  ;;  %v3464_v7 = vpop.f32.mrb[83].mxu0  ;;  %v4024_v44 = vmax.f32 %v3960_v29, 0.0 }
 0x311   :  { %v4100_v14 = vadd.f32 %v4099_v43, %v4098_v39  ;;  %v4105_v26 = vadd.f32 %v4104_v63, %v4022_v46  ;;  %v7854_v63 = vld [vmem:[#allocation2_spill] sm:$0xff] }
 0x312   :  { %v3890_v1 = vmul.f32 %v7424_v2, %v3749_v61  ;;  %v3752_v11 = vadd.f32 %v5136_v12, %v3751_v23 }
 0x313   :  { %v4156_v16 = vpack.c.bf16 %v4100_v14, %v4100_v14  ;;  %v4106_v3 = vadd.f32 %v4105_v26, %v4023_v58 }
 0x314   :  { %v3961_v36 = vadd.f32 %v7435_v59, %v3890_v1  ;;  %v3891_v41 = vmul.f32 %v7424_v2, %v3752_v11  ;;  %v7643_v15 = vpop.f32.mrb[172].mxu1  ;;  %v7855_v1 = vld [vmem:[#allocation3_spill] sm:$0xff] }
 0x315   :  { %v4200_v45 = vunpack.c.l.b16 %v4156_v16  ;;  %v4107_v27 = vadd.f32 %v4106_v3, %v4024_v44  ;;  %v3467_v13 = vpop.f32.mrb[84].mxu0  ;;  %v3764_v60 = vpop.f32.mrb[173].mxu1 }
 0x316   :  { %v3962_v48 = vadd.f32 %v7435_v59, %v3891_v41  ;;  %v5137_v38 = vadd.f32 %v3467_v13, %v7272_v52  ;;  %v3469_v6 = vpop.f32.mrb[85].mxu0  ;;  %v5046_v33 = vpop.f32.mrb[174].mxu1  ;;  %v4025_v51 = vmax.f32 %v3961_v36, 0.0 }
 0x317   :  { %v4108_v47 = vrot.slane %v4107_v27, 4  ;;  %v3470_v30 = vpop.f32.mrb[86].mxu0  ;;  %v3767_v0 = vpop.f32.mrb[175].mxu1  ;;  %v4210_v24 = vsel %vm4209_vm2, %v4200_v45, %v7623_v49 }
 0x318   :  { %v4026_v55 = vmax.f32 %v3962_v48, 0.0  ;;  %v3757_v32 = vadd.f32 %v5137_v38, %v5041_v42  ;;  %v5138_v31 = vadd.f32 %v3470_v30, %v7274_v57  ;;  %v3472_v20 = vpop.f32.mrb[87].mxu0  ;;  %v7856_v48 = vld [vmem:[#allocation4_spill] sm:$0xff] }
 0x319   :  { %v4109_v53 = vadd.f32 %v4108_v47, %v4107_v27 }
 0x31a   :  { %v4114_v17 = vadd.f32 %v4026_v55, %v4025_v51  ;;  %v3892_v21 = vmul.f32 %v7424_v2, %v3757_v32  ;;  %v3760_v50 = vadd.f32 %v5138_v31, %v5042_v37 }
 0x31b   :  { %v4110_v40 = vrot.slane %v4109_v53, 2 }
 0x31c   :  { %v3963_v52 = vadd.f32 %v7435_v59, %v3892_v21  ;;  %v3893_v56 = vmul.f32 %v7424_v2, %v3760_v50  ;;  %v7652_v4 = vpop.f32.mrb[176].mxu1 }
 0x31d   :  { %v4111_v8 = vadd.f32 %v4110_v40, %v4109_v53  ;;  %v3475_v49 = vpop.f32.mrb[88].mxu0  ;;  %v3780_v22 = vpop.f32.mrb[177].mxu1 }
 0x31e   :  { %v4027_v18 = vmax.f32 %v3963_v52, 0.0  ;;  %v3964_v25 = vadd.f32 %v7435_v59, %v3893_v56  ;;  %v5139_v57 = vadd.f32 %v3475_v49, %v7282_v9  ;;  %v3477_v5 = vpop.f32.mrb[89].mxu0  ;;  %v7656_v42 = vpop.f32.mrb[178].mxu1 }
 0x31f   :  { %v4112_v39 = vrot.slane %v4111_v8, 1  ;;  %v3478_v34 = vpop.f32.mrb[90].mxu0  ;;  %v3783_v28 = vpop.f32.mrb[179].mxu1 }
 0x320   :  { %v4115_v62 = vadd.f32 %v4114_v17, %v4027_v18  ;;  %v4028_v35 = vmax.f32 %v3964_v25, 0.0  ;;  %v5140_v29 = vadd.f32 %v3478_v34, %v7854_v63  ;;  %v3765_v19 = vadd.f32 %v5139_v57, %v3764_v60  ;;  %v3480_v54 = vpop.f32.mrb[91].mxu0 }
 0x321   :  { %v4113_v37 = vadd.f32 %v4112_v39, %v4111_v8  ;;  %v7858_v8 = vld [vmem:[#allocation6_spill] sm:$0xff] }
 0x322   :  { %v3894_v43 = vmul.f32 %v7424_v2, %v3765_v19  ;;  %v4116_v46 = vadd.f32 %v4115_v62, %v4028_v35  ;;  %v3768_v10 = vadd.f32 %v5140_v29, %v3767_v0 }
 0x323   :  { %v4157_v23 = vpack.c.bf16 %v4113_v37, %v4113_v37 }
 0x324   :  { %v3965_v9 = vadd.f32 %v7435_v59, %v3894_v43  ;;  %v3895_v12 = vmul.f32 %v7424_v2, %v3768_v10  ;;  %v7662_v61 = vpop.f32.mrb[180].mxu1  ;;  %v7859_v43 = vld [vmem:[#allocation7_spill] sm:$0xff] }
 0x325   :  { %v4201_v7 = vunpack.c.l.b16 %v4157_v23  ;;  %v3483_v14 = vpop.f32.mrb[92].mxu0  ;;  %v7664_v58 = vpop.f32.mrb[181].mxu1 }
 0x326   :  { %v4029_v44 = vmax.f32 %v3965_v9, 0.0  ;;  %v3966_v26 = vadd.f32 %v7435_v59, %v3895_v12  ;;  %v5141_v11 = vadd.f32 %v3483_v14, %v7855_v1  ;;  %v3485_v16 = vpop.f32.mrb[93].mxu0  ;;  %v7668_v3 = vpop.f32.mrb[182].mxu1  ;;  %v7860_v14 = vld [vmem:[#allocation8_spill] sm:$0xff] }
 0x327   :  { %v3486_v36 = vpop.f32.mrb[94].mxu0  ;;  %v7670_v41 = vpop.f32.mrb[183].mxu1  ;;  %v7672_v45 = vsel %vm4211_vm3, %v4201_v7, %v4210_v24  ;;  %v7708_v16 = vld [vmem:[%s7829_s2] ss:$0 sm:$0xff] }
 0x328   :  { %v4117_v27 = vadd.f32 %v4116_v46, %v4029_v44  ;;  %v4030_v13 = vmax.f32 %v3966_v26, 0.0  ;;  %v3773_v60 = vadd.f32 %v5141_v11, %v7643_v15  ;;  %v5142_v38 = vadd.f32 %v3486_v36, %v7856_v48  ;;  %v3488_v6 = vpop.f32.mrb[95].mxu0  ;;  %v7857_v15 = vld [vmem:[#allocation5_spill] sm:$0xff] }
 0x32a   :  { %v4118_v47 = vadd.f32 %v4117_v27, %v4030_v13  ;;  %v3896_v30 = vmul.f32 %v7424_v2, %v3773_v60  ;;  %v3776_v0 = vadd.f32 %v5142_v38, %v5046_v33 }
 0x32c   :  { %v3967_v51 = vadd.f32 %v7435_v59, %v3896_v30  ;;  %v3897_v55 = vmul.f32 %v7424_v2, %v3776_v0  ;;  %v7679_v32 = vpop.f32.mrb[184].mxu1  ;;  %v7861_v0 = vld [vmem:[#allocation9_spill] sm:$0xff] }
 0x32d   :  { %v3491_v31 = vpop.f32.mrb[96].mxu0  ;;  %v7681_v24 = vpop.f32.mrb[185].mxu1 }
 0x32e   :  { %v4031_v20 = vmax.f32 %v3967_v51, 0.0  ;;  %v3968_v53 = vadd.f32 %v7435_v59, %v3897_v55  ;;  %v5143_v17 = vadd.f32 %v3491_v31, %v7857_v15  ;;  %v3493_v21 = vpop.f32.mrb[97].mxu0  ;;  %v7685_v50 = vpop.f32.mrb[186].mxu1 }
 0x32f   :  { %v3494_v40 = vpop.f32.mrb[98].mxu0  ;;  %v7687_v52 = vpop.f32.mrb[187].mxu1 }
 0x330   :  { %v4119_v33 = vadd.f32 %v4118_v47, %v4031_v20  ;;  %v4032_v56 = vmax.f32 %v3968_v53, 0.0  ;;  %v5144_v49 = vadd.f32 %v3494_v40, %v7858_v8  ;;  %v3781_v18 = vadd.f32 %v5143_v17, %v3780_v22  ;;  %v3496_v25 = vpop.f32.mrb[99].mxu0  ;;  %v7717_v47 = vld [vmem:[%s7830_s3] ss:$0 sm:$0xff] }
 0x332   :  { %v4120_v57 = vadd.f32 %v4119_v33, %v4032_v56  ;;  %v3898_v5 = vmul.f32 %v7424_v2, %v3781_v18  ;;  %v3784_v39 = vadd.f32 %v5144_v49, %v3783_v28 }
 0x334   :  { %v4121_v34 = vrot.slane %v4120_v57, 4  ;;  %v3969_v62 = vadd.f32 %v7435_v59, %v3898_v5  ;;  %v3899_v35 = vmul.f32 %v7424_v2, %v3784_v39  ;;  %v7693_v63 = vpop.f32.mrb[188].mxu1  ;;  %v7863_v39 = vld [vmem:[#allocation11_spill] sm:$0xff] }
 0x335   :  { %v3499_v29 = vpop.f32.mrb[100].mxu0  ;;  %v7695_v19 = vpop.f32.mrb[189].mxu1 }
 0x336   :  { %v4122_v54 = vadd.f32 %v4121_v34, %v4120_v57  ;;  %v3970_v37 = vadd.f32 %v7435_v59, %v3899_v35  ;;  %v5145_v22 = vadd.f32 %v3499_v29, %v7859_v43  ;;  %v3501_v46 = vpop.f32.mrb[101].mxu0  ;;  %v7699_v10 = vpop.f32.mrb[190].mxu1  ;;  %v4033_v23 = vmax.f32 %v3969_v62, 0.0 }
 0x337   :  { %v3502_v28 = vpop.f32.mrb[102].mxu0  ;;  %v7701_v9 = vpop.f32.mrb[191].mxu1 }
 0x338   :  { %v4123_v12 = vrot.slane %v4122_v54, 2  ;;  %v4034_v7 = vmax.f32 %v3970_v37, 0.0  ;;  %v3789_v2 = vadd.f32 %v5145_v22, %v7652_v4  ;;  %v5146_v44 = vadd.f32 %v3502_v28, %v7860_v14  ;;  %v3504_v26 = vpop.f32.mrb[103].mxu0 }
 0x33a   :  { %v4124_v1 = vadd.f32 %v4123_v12, %v4122_v54  ;;  %v4127_v11 = vadd.f32 %v4034_v7, %v4033_v23  ;;  %v3900_v36 = vmul.f32 %v7708_v16, %v3789_v2  ;;  %v3792_v27 = vadd.f32 %v5146_v44, %v7656_v42  ;;  %v7864_v54 = vld [vmem:[#allocation12_spill] sm:$0xff]  ;;  %v7865_v44 = vld [vmem:[#allocation13_spill] sm:$0xff] }
 0x33c   :  { %v4125_v13 = vrot.slane %v4124_v1, 1  ;;  %v3971_v60 = vadd.f32 %v7435_v59, %v3900_v36  ;;  %v3901_v48 = vmul.f32 %v7708_v16, %v3792_v27  ;;  %v7862_v59 = vld [vmem:[#allocation10_spill] sm:$0xff] }
 0x33d   :  { %v3507_v4 = vpop.f32.mrb[104].mxu0  ;;  %v7866_v27 = vld [vmem:[#allocation14_spill] sm:$0xff] }
 0x33e   :  { %v4126_v38 = vadd.f32 %v4125_v13, %v4124_v1  ;;  %v4035_v6 = vmax.f32 %v3971_v60, 0.0  ;;  %v3972_v30 = vadd.f32 %v7717_v47, %v3901_v48  ;;  %v5147_v51 = vadd.f32 %v3507_v4, %v7861_v0  ;;  %v3509_v55 = vpop.f32.mrb[105].mxu0 }
 0x33f   :  { %v3510_v31 = vpop.f32.mrb[106].mxu0 }
 0x340   :  { %v4158_v42 = vpack.c.bf16 %v4126_v38, %v4126_v38  ;;  %v4128_v20 = vadd.f32 %v4127_v11, %v4035_v6  ;;  %v4036_v53 = vmax.f32 %v3972_v30, 0.0  ;;  %v5148_v15 = vadd.f32 %v3510_v31, %v7862_v59  ;;  %v3512_v17 = vpop.f32.mrb[107].mxu0 }
 0x341   :  { %v3797_v21 = vadd.f32 %v5147_v51, %v7664_v58 }
 0x342   :  { %v4202_v40 = vunpack.c.l.b16 %v4158_v42  ;;  %v4129_v33 = vadd.f32 %v4128_v20, %v4036_v53  ;;  %v3800_v56 = vadd.f32 %v5148_v15, %v7670_v41  ;;  %v7867_v42 = vld [vmem:[#allocation15_spill] sm:$0xff] }
 0x343   :  { %v3902_v8 = vmul.f32 %v7708_v16, %v3797_v21 }
 0x344   :  { %v3903_v49 = vmul.f32 %v7708_v16, %v3800_v56  ;;  %v7727_v18 = vsel %vm4213_vm4, %v4202_v40, %v7672_v45  ;;  %v7868_v40 = vld [vmem:[#allocation16_spill] sm:$0xff] }
 0x345   :  { %v3973_v25 = vadd.f32 %v7717_v47, %v3902_v8  ;;  %v3515_v57 = vpop.f32.mrb[108].mxu0 }
 0x346   :  { %v3974_v5 = vadd.f32 %v7717_v47, %v3903_v49  ;;  %v5149_v34 = vadd.f32 %v3515_v57, %v7863_v39  ;;  %v3517_v58 = vpop.f32.mrb[109].mxu0 }
 0x347   :  { %v4037_v62 = vmax.f32 %v3973_v25, 0.0  ;;  %v3518_v35 = vpop.f32.mrb[110].mxu0 }
 0x348   :  { %v4038_v29 = vmax.f32 %v3974_v5, 0.0  ;;  %v3805_v41 = vadd.f32 %v5149_v34, %v7662_v61  ;;  %v5150_v37 = vadd.f32 %v3518_v35, %v7864_v54  ;;  %v3520_v43 = vpop.f32.mrb[111].mxu0 }
 0x349   :  { %v4130_v22 = vadd.f32 %v4129_v33, %v4037_v62 }
 0x34a   :  { %v3904_v45 = vmul.f32 %v7708_v16, %v3805_v41  ;;  %v3808_v46 = vadd.f32 %v5150_v37, %v7668_v3 }
 0x34b   :  { %v4131_v23 = vadd.f32 %v4130_v22, %v4038_v29 }
 0x34c   :  { %v3975_v28 = vadd.f32 %v7717_v47, %v3904_v45  ;;  %v3905_v12 = vmul.f32 %v7708_v16, %v3808_v46  ;;  %v7870_v45 = vld [vmem:[#allocation18_spill] sm:$0xff] }
 0x34d   :  { %v3523_v7 = vpop.f32.mrb[112].mxu0 }
 0x34e   :  { %v4039_v2 = vmax.f32 %v3975_v28, 0.0  ;;  %v3976_v14 = vadd.f32 %v7717_v47, %v3905_v12  ;;  %v5151_v26 = vadd.f32 %v3523_v7, %v7865_v44  ;;  %v3525_v61 = vpop.f32.mrb[113].mxu0 }
 0x34f   :  { %v3526_v1 = vpop.f32.mrb[114].mxu0 }
 0x350   :  { %v4132_v11 = vadd.f32 %v4131_v23, %v4039_v2  ;;  %v4040_v36 = vmax.f32 %v3976_v14, 0.0  ;;  %v5152_v13 = vadd.f32 %v3526_v1, %v7866_v27  ;;  %v3813_v60 = vadd.f32 %v5151_v26, %v7681_v24  ;;  %v3528_v3 = vpop.f32.mrb[115].mxu0 }
 0x352   :  { %v4133_v48 = vadd.f32 %v4132_v11, %v4040_v36  ;;  %v3906_v4 = vmul.f32 %v7708_v16, %v3813_v60  ;;  %v3816_v38 = vadd.f32 %v5152_v13, %v7687_v52  ;;  %v7871_v11 = vld [vmem:[#allocation19_spill] sm:$0xff] }
 0x354   :  { %v4134_v6 = vrot.slane %v4133_v48, 4  ;;  %v3977_v30 = vadd.f32 %v7717_v47, %v3906_v4  ;;  %v3907_v0 = vmul.f32 %v7708_v16, %v3816_v38 }
 0x355   :  { %v3531_v51 = vpop.f32.mrb[116].mxu0 }
 0x356   :  { %v4135_v55 = vadd.f32 %v4134_v6, %v4133_v48  ;;  %v3978_v31 = vadd.f32 %v7717_v47, %v3907_v0  ;;  %v5153_v20 = vadd.f32 %v3531_v51, %v7867_v42  ;;  %v3533_v53 = vpop.f32.mrb[117].mxu0  ;;  %v4041_v59 = vmax.f32 %v3977_v30, 0.0 }
 0x357   :  { %v3534_v24 = vpop.f32.mrb[118].mxu0 }
 0x358   :  { %v4136_v15 = vrot.slane %v4135_v55, 2  ;;  %v4042_v17 = vmax.f32 %v3978_v31, 0.0  ;;  %v3821_v21 = vadd.f32 %v5153_v20, %v7679_v32  ;;  %v5154_v52 = vadd.f32 %v3534_v24, %v7868_v40  ;;  %v3536_v33 = vpop.f32.mrb[119].mxu0  ;;  %v7869_v32 = vld [vmem:[#allocation17_spill] sm:$0xff] }
 0x35a   :  { %v4137_v56 = vadd.f32 %v4136_v15, %v4135_v55  ;;  %v4140_v8 = vadd.f32 %v4042_v17, %v4041_v59  ;;  %v3908_v49 = vmul.f32 %v7708_v16, %v3821_v21  ;;  %v3824_v25 = vadd.f32 %v5154_v52, %v7685_v50 }
 0x35c   :  { %v4138_v57 = vrot.slane %v4137_v56, 1  ;;  %v3979_v5 = vadd.f32 %v7717_v47, %v3908_v49  ;;  %v3909_v39 = vmul.f32 %v7708_v16, %v3824_v25  ;;  %v5933_v49 = vld [vmem:[%s7831_s6 + $0x10] sm:$0xff]   ;;  %v5934_v25 = vld [vmem:[%s7831_s6 + $0x58] sm:$0xff]  }
 0x35d   :  { %v3539_v34 = vpop.f32.mrb[120].mxu0 }
 0x35e   :  { %v4139_v58 = vadd.f32 %v4138_v57, %v4137_v56  ;;  %v4043_v62 = vmax.f32 %v3979_v5, 0.0  ;;  %v3980_v35 = vadd.f32 %v7717_v47, %v3909_v39  ;;  %v5155_v29 = vadd.f32 %v3539_v34, %v7869_v32  ;;  %v3541_v41 = vpop.f32.mrb[121].mxu0  ;;  %v5931_v56 = vld [vmem:[%s7831_s6 + $0x8] sm:$0xff]   ;;  %v5935_v57 = vld [vmem:[%s7831_s6 + $0x18] sm:$0xff]   ;;  %v5936_v5 = vld [vmem:[%s7831_s6 + $0x60] sm:$0xff]  }
 0x35f   :  { %v3542_v54 = vpop.f32.mrb[122].mxu0  ;;  %v5937_v39 = vld [vmem:[%s7831_s6 + $0x20] sm:$0xff]   ;;  %v5938_v34 = vld [vmem:[%s7831_s6 + $0x68] sm:$0xff]   ;;  %v5942_v32 = vld [vmem:[%s7831_s6 + $0x78] sm:$0xff]   ;;  %v4179_v41 = vlaneseq }
 0x360   :  { %v4159_v37 = vpack.c.bf16 %v4139_v58, %v4139_v58  ;;  %v4141_v43 = vadd.f32 %v4140_v8, %v4043_v62  ;;  %v4044_v22 = vmax.f32 %v3980_v35, 0.0  ;;  %v5156_v46 = vadd.f32 %v3542_v54, %v7870_v45  ;;  %v3544_v50 = vpop.f32.mrb[123].mxu0  ;;  %v5932_v8 = vld [vmem:[%s7831_s6 + $0x50] sm:$0xff]   ;;  %v5939_v58 = vld [vmem:[%s7831_s6 + $0x28] sm:$0xff]  }
 0x361   :  { %v3829_v23 = vadd.f32 %v5155_v29, %v7695_v19  ;;  %v5940_v62 = vld [vmem:[%s7831_s6 + $0x70] sm:$0xff]   ;;  %v5943_v29 = vld [vmem:[%s7831_s6 + $0x38] sm:$0xff]   ;;  %v4180_v54 = vshrl.u32 %v4179_v41, 7 }
 0x362   :  { %v4203_v28 = vunpack.c.l.b16 %v4159_v37  ;;  %v4142_v12 = vadd.f32 %v4141_v43, %v4044_v22  ;;  %v3832_v7 = vadd.f32 %v5156_v46, %v7701_v9  ;;  %v7872_v9 = vld [vmem:[#allocation20_spill] sm:$0xff]  ;;  %v4177_v43 = vld [vmem:[%s7832_s5] sm:$0x3] }
 0x363   :  { %v3910_v2 = vmul.f32 %v7708_v16, %v3829_v23  ;;  %v5941_v35 = vld [vmem:[%s7831_s6 + $0x30] sm:$0xff]   ;;  %v4181_v37 = vsub.s32 0, %v4180_v54  ;;  %v4185_v22 = vsub.s32 1, %v4180_v54 }
 0x364   :  { %v3911_v14 = vmul.f32 %v7708_v16, %v3832_v7  ;;  %v4216_v44 = vsel %vm4215_vm5, %v4203_v28, %v7727_v18 }
 0x365   :  { %v3981_v26 = vadd.f32 %v7717_v47, %v3910_v2  ;;  %v3547_v61 = vpop.f32.mrb[124].mxu0  ;;  %v4182_v45 = vrot.slane %v4177_v43, %v4181_v37  ;;  %v4186_v46 = vrot.slane %v4177_v43, %v4185_v22 }
 0x366   :  { %v3982_v1 = vadd.f32 %v7717_v47, %v3911_v14  ;;  %v5157_v36 = vadd.f32 %v3547_v61, %v7871_v11  ;;  %v3549_v27 = vpop.f32.mrb[125].mxu0  ;;  %v4904_v11 = vld [vmem:[%s7833_s7] ss:$0 sm:$0xff] }
 0x367   :  { %v4045_v19 = vmax.f32 %v3981_v26, 0.0  ;;  %v3550_v13 = vpop.f32.mrb[126].mxu0 }
 0x368   :  { %v4046_v60 = vmax.f32 %v3982_v1, 0.0  ;;  %v3837_v3 = vadd.f32 %v5157_v36, %v7693_v63  ;;  %v5158_v48 = vadd.f32 %v3550_v13, %v7872_v9  ;;  %v3552_v4 = vpop.f32.mrb[127].mxu0 }
 0x369   :  { %v4143_v38 = vadd.f32 %v4142_v12, %v4045_v19 }
 0x36a   :  { %v3912_v6 = vmul.f32 %v7708_v16, %v3837_v3  ;;  %v3840_v18 = vadd.f32 %v5158_v48, %v7699_v10 }
 0x36b   :  { %v4144_v30 = vadd.f32 %v4143_v38, %v4046_v60 }
 0x36c   :  { %v3983_v0 = vadd.f32 %v7717_v47, %v3912_v6  ;;  %v3913_v51 = vmul.f32 %v7708_v16, %v3840_v18  ;;  %v5929_v16 = vld [vmem:[%s7831_s6] sm:$0xff]  }
 0x36e   :  { %v4047_v55 = vmax.f32 %v3983_v0, 0.0  ;;  %v3984_v31 = vadd.f32 %v7717_v47, %v3913_v51  ;;  %v5930_v47 = vld [vmem:[%s7831_s6 + $0x48] sm:$0xff]  }
 0x370   :  { %v4145_v42 = vadd.f32 %v4144_v30, %v4047_v55  ;;  %v4048_v20 = vmax.f32 %v3984_v31, 0.0 }
 0x372   :  { %v4146_v53 = vadd.f32 %v4145_v42, %v4048_v20 }
 0x374   :  { %v4147_v63 = vrot.slane %v4146_v53, 4 }
 0x376   :  { %v4148_v59 = vadd.f32 %v4147_v63, %v4146_v53 }
 0x378   :  { %v4149_v24 = vrot.slane %v4148_v59, 2 }
 0x37a   :  { %v4150_v15 = vadd.f32 %v4149_v24, %v4148_v59 }
 0x37c   :  { %v4151_v17 = vrot.slane %v4150_v15, 1 }
 0x37e   :  { %v4152_v21 = vadd.f32 %v4151_v17, %v4150_v15 }
 0x380   :  { %v4160_v40 = vpack.c.bf16 %v4152_v21, %v4152_v21 }
 0x382   :  { %v4204_v10 = vunpack.c.l.b16 %v4160_v40 }
 0x384   :  { %v4218_v52 = vsel %vm4217_vm6, %v4204_v10, %v4216_v44 }
 0x385   :  { %v4219_v33 = vpack.c.b16 %v4218_v52, %v4218_v52 }
 0x387   :  { %4334 = vmatmul.mubr.bf16.vlgmr.msra.gmra.mrb[192].mxu1 %v4219_v33 }
 0x388   :  { %4962 = vmatpush3.bf16.msra.mxu1 %v5929_v16 }
 0x389   :  { %4963 = vmatprep.subr.bf16.mxu1 %v5930_v47 }
 0x38c   :  { %4964 = vmatpush3.bf16.msra.mxu1 %v5931_v56 }
 0x38d   :  { %4965 = vmatprep.subr.bf16.mxu1 %v5932_v8 }
 0x390   :  { %4966 = vmatpush3.bf16.msra.mxu1 %v5933_v49 }
 0x391   :  { %4967 = vmatprep.subr.bf16.mxu1 %v5934_v25 }
 0x394   :  { %4968 = vmatpush3.bf16.msra.mxu1 %v5935_v57 }
 0x395   :  { %4969 = vmatprep.subr.bf16.mxu1 %v5936_v5 }
 0x398   :  { %4970 = vmatpush3.bf16.msra.mxu1 %v5937_v39 }
 0x399   :  { %4971 = vmatprep.subr.bf16.mxu1 %v5938_v34 }
 0x39c   :  { %4972 = vmatpush3.bf16.msra.mxu1 %v5939_v58 }
 0x39d   :  { %4973 = vmatprep.subr.bf16.mxu1 %v5940_v62 }
 0x3a0   :  { %4974 = vmatpush3.bf16.msra.mxu1 %v5941_v35 }
 0x3a1   :  { %4975 = vmatprep.subr.bf16.mxu1 %v5942_v32 }
 0x3a4   :  { %4976 = vmatpush3.bf16.msra.mxu1 %v5943_v29 }
 0x45a   :  { %v4335_v50 = vpop.f32.mrb[192].mxu1 }
 0x45b   :  { %v4336_v23 = vadd.f32 %v4335_v50, %v4182_v45  ;;  %v4337_v28 = vpop.f32.mrb[193].mxu1 }
 0x45c   :  { %v4338_v12 = vadd.f32 %v4337_v28, %v4186_v46  ;;  %v4339_v7 = vpop.f32.mrb[194].mxu1 }
 0x45d   :  { %v4342_v2 = vmax.f32 %v4336_v23, 0.0  ;;  %v4340_v14 = vpop.f32.mrb[195].mxu1 }
 0x45e   :  { %v4343_v44 = vmax.f32 %v4338_v12, 0.0 }
 0x45f   :  { %v4344_v61 = vpack.c.bf16 %v4342_v2, %v4342_v2 }
 0x460   :  { %v4345_v26 = vpack.c.bf16 %v4343_v44, %v4343_v44 }
 0x462   :  { %4513 = vmatprep.mubr.bf16.mxu1 %v4345_v26 }
 0x463   :  { %4514 = vmatmul.mubr.bf16.vlgmr.msra.gmra.mrb[196].mxu1 %v4344_v61 }
 0x536   :  { %v4977_v1 = vpop.f32.mrb[196].mxu1 }
 0x537   :  { %v4978_v36 = vpop.f32.mrb[197].mxu1 }
 0x538   :  { %v4979_v27 = vadd.f32 %v4978_v36, %v4977_v1  ;;  %v4980_v19 = vpop.f32.mrb[198].mxu1 }
 0x539   :  { %v4981_v13 = vpop.f32.mrb[199].mxu1 }
 0x53a   :  { %v4516_v60 = vadd.f32 %v4979_v27, %v4904_v11 }
 0x53c   :  { %4521 = vst [vmem:[%s7834_s8] sm:$0xff] %v4516_v60 }

</bundles_post_ra>
